<compile_context>
chip_gen: v7x
topology: tpu7x:2x2x1
jax: 0.10.0
libtpu: 0.0.40
codegen_flags: <defaults>
</compile_context>

<pallas_src>
import functools

import jax
import jax.numpy as jnp
import numpy as np
from jax import lax
from jax.experimental import pallas as pl
from jax.experimental.pallas import tpu as pltpu


def fire_kernel(x_main_ref, x_top_ref, x_bot_ref, mask_ref,
                wsq_ref, bsq_ref, w_top_ref, w_mid_ref, w_bot_ref, b_ref,
                out_ref, *, W, TH, compute_dtype):
    """One (batch, row-tile) grid step.

    x_main_ref : (1, TH*W, Cin)      rows of this tile
    x_top_ref  : (1, W,    Cin)      image row just above the tile (clamped)
    x_bot_ref  : (1, W,    Cin)      image row just below the tile (clamped)
    mask_ref   : (1, (TH+2)*W, 3)    [halo_row_valid, left_valid, right_valid]
    out_ref    : (1, TH*W, Ce1+Ce3)
    """
    M_out = TH * W
    Csq = wsq_ref.shape[1]

    # ---- squeeze 1x1 conv (f32 accumulation) over the halo-extended tile ----
    def squeeze(x):
        return jnp.dot(x, wsq_ref[...], preferred_element_type=jnp.float32)

    s = jnp.concatenate(
        [squeeze(x_top_ref[0]), squeeze(x_main_ref[0]), squeeze(x_bot_ref[0])],
        axis=0)                                           # ((TH+2)*W, Csq) f32
    s = jnp.maximum(s + bsq_ref[...], 0.0)

    # Cast early: halves VPU/XLU halo traffic and vreg/VMEM pressure.
    s = s.astype(compute_dtype)

    m = mask_ref[0]                                       # ((TH+2)*W, 3)
    s = s * m[:, 0:1]        # zero rows outside the image (3x3 conv zero-pad)

    # Column-shifted copies (w-1 / w+1) on the flattened row-major axis;
    # wrong-row pickups at column edges are zeroed by the masks.
    zrow = jnp.zeros((1, Csq), compute_dtype)
    s_left = jnp.concatenate([zrow, s[:-1, :]], axis=0) * m[:, 1:2]
    s_right = jnp.concatenate([s[1:, :], zrow], axis=0) * m[:, 2:3]
    s3 = jnp.concatenate([s_left, s, s_right], axis=-1)   # ((TH+2)*W, 3*Csq)

    # Row slabs r-1 / r / r+1 for every output position (static sublane slices).
    above = s3[:M_out]
    center = s3[W:W + M_out]
    below = s3[2 * W:]

    # ---- fused expand: expand1x1 rides in the center-tap rows of w_mid ----
    acc = jnp.dot(center, w_mid_ref[...], preferred_element_type=jnp.float32)
    acc = acc + jnp.dot(above, w_top_ref[...], preferred_element_type=jnp.float32)
    acc = acc + jnp.dot(below, w_bot_ref[...], preferred_element_type=jnp.float32)

    out_ref[0] = jnp.maximum(acc + b_ref[...], 0.0).astype(out_ref.dtype)


def _vmem_limit_bytes() -> int:
    """Generation-aware VMEM budget: leave headroom (esp. v7x: 64 MiB physical)."""
    cap = 64 * 1024 * 1024  # conservative fallback (v7x-sized)
    try:
        cap = int(pltpu.get_tpu_info().vmem_capacity_bytes)
    except Exception:
        pass
    return int(min(64 * 1024 * 1024, (cap * 3) // 4))


def _pick_row_tile(H: int, W: int) -> int:
    """Largest divisor of H keeping <= ~2048 output pixels per grid step."""
    target = max(1, 2048 // max(W, 1))
    for th in range(min(H, target), 0, -1):
        if H % th == 0:
            return th
    return H


def _edge_masks(H, W, TH, dtype):
    """(nT, (TH+2)*W, 3) masks: [halo_row_valid, left_valid, right_valid]."""
    nT = H // TH
    m = np.ones((nT, TH + 2, W, 3), np.float32)
    rows = np.arange(TH + 2)
    cols = np.arange(W)
    for t in range(nT):
        g = t * TH - 1 + rows                      # global row of each extended row
        m[t, :, :, 0] = ((g >= 0) & (g < H)).astype(np.float32)[:, None]
    m[:, :, :, 1] = (cols != 0).astype(np.float32)[None, None, :]
    m[:, :, :, 2] = (cols != W - 1).astype(np.float32)[None, None, :]
    return jnp.asarray(m.reshape(nT, (TH + 2) * W, 3), dtype)


def fire_block_pallas_nhwc(x_flat, wsq, bsq, w1, b1, w3, b3, *, H, W,
                           row_tile=None, compute_dtype=jnp.bfloat16,
                           out_dtype=None):
    """x_flat: (N, H*W, Cin) channels-last. Returns (N, H*W, Ce1+Ce3) in out_dtype
    (default = compute_dtype = bf16).  Chained Fire blocks should stay in this
    layout so no NCHW<->NHWC transposes are paid between blocks."""
    N, M, Cin = x_flat.shape
    assert M == H * W
    if W % 8 != 0:
        # TODO(synk): pad W to a multiple of 8 in the wrapper for real
        # SqueezeNet maps (55/27/13 wide) so the halo BlockSpecs stay legal.
        raise NotImplementedError("fire_block_pallas_nhwc requires W % 8 == 0")
    Csq = wsq.shape[0]
    Ce1 = w1.shape[0]
    Ce3 = w3.shape[0]
    Cout = Ce1 + Ce3
    out_dtype = compute_dtype if out_dtype is None else out_dtype
    f32 = jnp.float32

    TH = _pick_row_tile(H, W) if row_tile is None else int(row_tile)
    if H % TH != 0:
        raise ValueError(f"row_tile={TH} must divide H={H}")
    nT = H // TH
    M_tile = TH * W
    M_ext = M_tile + 2 * W

    x_cd = x_flat.astype(compute_dtype)

    # ---- weight packing: squeeze (Cin, Csq); fused expand (3*Csq, Ce1+Ce3) ----
    wsq_k = jnp.transpose(wsq[:, :, 0, 0], (1, 0)).astype(compute_dtype)   # (Cin, Csq)
    bsq_k = bsq.reshape(1, Csq).astype(f32)
    w1_k = jnp.transpose(w1[:, :, 0, 0], (1, 0)).astype(f32)               # (Csq, Ce1)
    w3_k = jnp.transpose(w3, (2, 3, 1, 0)).astype(f32)                     # (ky,kx,Csq,Ce3)

    def w3_row(ky):  # (3*Csq, Ce3); K ordered [w-1, w, w+1] to match s3
        return jnp.concatenate([w3_k[ky, 0], w3_k[ky, 1], w3_k[ky, 2]], axis=0)

    zeros_e1 = jnp.zeros((3 * Csq, Ce1), f32)
    w1_mid = jnp.concatenate(
        [jnp.zeros((Csq, Ce1), f32), w1_k, jnp.zeros((Csq, Ce1), f32)], axis=0)
    w_top = jnp.concatenate([zeros_e1, w3_row(0)], axis=1).astype(compute_dtype)
    w_mid = jnp.concatenate([w1_mid, w3_row(1)], axis=1).astype(compute_dtype)
    w_bot = jnp.concatenate([zeros_e1, w3_row(2)], axis=1).astype(compute_dtype)
    b_fused = jnp.concatenate([b1, b3]).reshape(1, Cout).astype(f32)

    masks = _edge_masks(H, W, TH, compute_dtype)            # (nT, M_ext, 3)

    full = lambda a: pl.BlockSpec(a.shape, lambda n, t: (0,) * a.ndim)
    kernel = functools.partial(fire_kernel, W=W, TH=TH, compute_dtype=compute_dtype)

    out_flat = pl.pallas_call(
        kernel,
        out_shape=jax.ShapeDtypeStruct((N, M, Cout), out_dtype),
        grid=(N, nT),
        in_specs=[
            # rows of this tile
            pl.BlockSpec((1, M_tile, Cin), lambda n, t: (n, t, 0)),
            # 1-row halo above / below the tile (clamped at image edges; the
            # clamped duplicates are zeroed by the mask).
            pl.BlockSpec((1, W, Cin),
                         lambda n, t: (n, jnp.maximum(t * TH - 1, 0), 0)),
            pl.BlockSpec((1, W, Cin),
                         lambda n, t: (n, jnp.minimum(t * TH + TH, H - 1), 0)),
            # precomputed edge masks for this row tile (no in-kernel div/mod)
            pl.BlockSpec((1, M_ext, 3), lambda n, t: (t, 0, 0)),
            full(wsq_k), full(bsq_k), full(w_top), full(w_mid), full(w_bot),
            full(b_fused),
        ],
        out_specs=pl.BlockSpec((1, M_tile, Cout), lambda n, t: (n, t, 0)),
        compiler_params=pltpu.CompilerParams(
            dimension_semantics=("parallel", "parallel"),
            vmem_limit_bytes=_vmem_limit_bytes(),
        ),
    )(x_cd, x_cd, x_cd, masks, wsq_k, bsq_k, w_top, w_mid, w_bot, b_fused)
    # TODO(synk): for the small 13x13 Fire layers, pack several batch images
    # into one grid step to amortize the ~0.35us per-step overhead.
    return out_flat


def fire_block_pallas(x_nchw, wsq, bsq, w1, b1, w3, b3, **kwargs):
    """NCHW boundary wrapper (matches the PyTorch module's convention). Convert
    only at model boundaries; chained blocks should use fire_block_pallas_nhwc."""
    N, Cin, H, W = x_nchw.shape
    x_flat = jnp.transpose(x_nchw, (0, 2, 3, 1)).reshape(N, H * W, Cin)
    out_flat = fire_block_pallas_nhwc(x_flat, wsq, bsq, w1, b1, w3, b3,
                                      H=H, W=W, **kwargs)
    Cout = w1.shape[0] + w3.shape[0]
    return jnp.transpose(out_flat.reshape(N, H, W, Cout), (0, 3, 1, 2))


def _reference(x, wsq, bsq, w1, b1, w3, b3):
    dn = ("NCHW", "OIHW", "NCHW")
    s = lax.conv_general_dilated(x, wsq, (1, 1), "VALID", dimension_numbers=dn)
    s = jax.nn.relu(s + bsq[None, :, None, None])
    e1 = lax.conv_general_dilated(s, w1, (1, 1), "VALID", dimension_numbers=dn)
    e1 = jax.nn.relu(e1 + b1[None, :, None, None])
    e3 = lax.conv_general_dilated(s, w3, (1, 1), ((1, 1), (1, 1)), dimension_numbers=dn)
    e3 = jax.nn.relu(e3 + b3[None, :, None, None])
    return jnp.concatenate([e1, e3], axis=1)


if __name__ == "__main__":
    # Small Fire-module-consistent shapes.
    N, Cin, H, W = 2, 16, 16, 16
    Csq, Ce1, Ce3 = 8, 16, 16

    key = jax.random.PRNGKey(0)
    ks = jax.random.split(key, 7)
    x = jax.random.normal(ks[0], (N, Cin, H, W), jnp.float32)
    wsq = jax.random.normal(ks[1], (Csq, Cin, 1, 1), jnp.float32) * 0.1
    bsq = jax.random.normal(ks[2], (Csq,), jnp.float32) * 0.1
    w1 = jax.random.normal(ks[3], (Ce1, Csq, 1, 1), jnp.float32) * 0.1
    b1 = jax.random.normal(ks[4], (Ce1,), jnp.float32) * 0.1
    w3 = jax.random.normal(ks[5], (Ce3, Csq, 3, 3), jnp.float32) * 0.1
    b3 = jax.random.normal(ks[6], (Ce3,), jnp.float32) * 0.1

    ref = jax.block_until_ready(_reference(x, wsq, bsq, w1, b1, w3, b3))
    ref_np = np.asarray(ref)

    # Single row tile (whole image per step) and 4 row tiles (exercises the
    # 1-row halo / seam-masking path that keeps both v7x TensorCores busy).
    for rt in (None, 4):
        out = fire_block_pallas(x, wsq, bsq, w1, b1, w3, b3, row_tile=rt)
        out = jax.block_until_ready(out)
        assert out.shape == (N, Ce1 + Ce3, H, W), out.shape
        out_np = np.asarray(out.astype(jnp.float32))
        # bf16 operands + bf16 output with f32 accumulation -> relaxed tolerance.
        np.testing.assert_allclose(out_np, ref_np, atol=5e-2, rtol=5e-2)

    print("KERNEL_OK")
</pallas_src>

<mosaic_0001>
module attributes {stable_mosaic.version = 11 : i64} {
  func.func @fire_kernel(%arg0: i32, %arg1: i32, %arg2: memref<1x256x16xbf16, #tpu.memory_space<vmem>>, %arg3: memref<1x16x16xbf16, #tpu.memory_space<vmem>>, %arg4: memref<1x16x16xbf16, #tpu.memory_space<vmem>>, %arg5: memref<1x288x3xbf16, #tpu.memory_space<vmem>>, %arg6: memref<16x8xbf16, #tpu.memory_space<vmem>>, %arg7: memref<1x8xf32, #tpu.memory_space<vmem>>, %arg8: memref<24x32xbf16, #tpu.memory_space<vmem>>, %arg9: memref<24x32xbf16, #tpu.memory_space<vmem>>, %arg10: memref<24x32xbf16, #tpu.memory_space<vmem>>, %arg11: memref<1x32xf32, #tpu.memory_space<vmem>>, %arg12: memref<1x256x32xbf16, #tpu.memory_space<vmem>>) attributes {dimension_semantics = [#tpu.dimension_semantics<parallel>, #tpu.dimension_semantics<parallel>], iteration_bounds = array<i64: 2, 1>, scalar_prefetch = 0 : i64, scratch_operands = 0 : i64, tpu.core_type = #tpu.core_type<tc>, window_params = [{transform_indices = @transform_0, window_bounds = array<i64: 1, 256, 16>}, {transform_indices = @transform_1, window_bounds = array<i64: 1, 16, 16>}, {transform_indices = @transform_2, window_bounds = array<i64: 1, 16, 16>}, {transform_indices = @transform_3, window_bounds = array<i64: 1, 288, 3>}, {pipeline_mode = #tpu.pipeline_mode<synchronous>, transform_indices = @transform_4, window_bounds = array<i64: 16, 8>}, {pipeline_mode = #tpu.pipeline_mode<synchronous>, transform_indices = @transform_5, window_bounds = array<i64: 1, 8>}, {pipeline_mode = #tpu.pipeline_mode<synchronous>, transform_indices = @transform_6, window_bounds = array<i64: 24, 32>}, {pipeline_mode = #tpu.pipeline_mode<synchronous>, transform_indices = @transform_7, window_bounds = array<i64: 24, 32>}, {pipeline_mode = #tpu.pipeline_mode<synchronous>, transform_indices = @transform_8, window_bounds = array<i64: 24, 32>}, {pipeline_mode = #tpu.pipeline_mode<synchronous>, transform_indices = @transform_9, window_bounds = array<i64: 1, 32>}, {transform_indices = @transform_10, window_bounds = array<i64: 1, 256, 32>}]} {
    %c0 = arith.constant 0 : index
    %c0_0 = arith.constant 0 : index
    %c0_1 = arith.constant 0 : index
    %0 = vector.load %arg3[%c0, %c0_0, %c0_1] : memref<1x16x16xbf16, #tpu.memory_space<vmem>>, vector<1x16x16xbf16>
    %1 = vector.shape_cast %0 : vector<1x16x16xbf16> to vector<16x16xbf16>
    %c0_2 = arith.constant 0 : index
    %c0_3 = arith.constant 0 : index
    %2 = vector.load %arg6[%c0_2, %c0_3] : memref<16x8xbf16, #tpu.memory_space<vmem>>, vector<16x8xbf16>
    %cst = arith.constant dense<0.000000e+00> : vector<16x8xf32>
    %3 = tpu.matmul %1, %2, %cst {dimension_numbers = #tpu.dot_dimension_numbers<[1], [0], [0], [1], [0, 0, 1, 1], [], []>} : vector<16x16xbf16>, vector<16x8xbf16>, vector<16x8xf32> -> vector<16x8xf32>
    %c0_4 = arith.constant 0 : index
    %c0_5 = arith.constant 0 : index
    %c0_6 = arith.constant 0 : index
    %4 = vector.load %arg2[%c0_4, %c0_5, %c0_6] : memref<1x256x16xbf16, #tpu.memory_space<vmem>>, vector<1x256x16xbf16>
    %5 = vector.shape_cast %4 : vector<1x256x16xbf16> to vector<256x16xbf16>
    %c0_7 = arith.constant 0 : index
    %c0_8 = arith.constant 0 : index
    %6 = vector.load %arg6[%c0_7, %c0_8] : memref<16x8xbf16, #tpu.memory_space<vmem>>, vector<16x8xbf16>
    %cst_9 = arith.constant dense<0.000000e+00> : vector<256x8xf32>
    %7 = tpu.matmul %5, %6, %cst_9 {dimension_numbers = #tpu.dot_dimension_numbers<[1], [0], [0], [1], [0, 0, 1, 1], [], []>} : vector<256x16xbf16>, vector<16x8xbf16>, vector<256x8xf32> -> vector<256x8xf32>
    %c0_10 = arith.constant 0 : index
    %c0_11 = arith.constant 0 : index
    %c0_12 = arith.constant 0 : index
    %8 = vector.load %arg4[%c0_10, %c0_11, %c0_12] : memref<1x16x16xbf16, #tpu.memory_space<vmem>>, vector<1x16x16xbf16>
    %9 = vector.shape_cast %8 : vector<1x16x16xbf16> to vector<16x16xbf16>
    %c0_13 = arith.constant 0 : index
    %c0_14 = arith.constant 0 : index
    %10 = vector.load %arg6[%c0_13, %c0_14] : memref<16x8xbf16, #tpu.memory_space<vmem>>, vector<16x8xbf16>
    %cst_15 = arith.constant dense<0.000000e+00> : vector<16x8xf32>
    %11 = tpu.matmul %9, %10, %cst_15 {dimension_numbers = #tpu.dot_dimension_numbers<[1], [0], [0], [1], [0, 0, 1, 1], [], []>} : vector<16x16xbf16>, vector<16x8xbf16>, vector<16x8xf32> -> vector<16x8xf32>
    %12 = tpu.concatenate %3, %7, %11 in 0 : vector<16x8xf32>, vector<256x8xf32>, vector<16x8xf32> -> vector<288x8xf32>
    %c0_16 = arith.constant 0 : index
    %c0_17 = arith.constant 0 : index
    %13 = vector.load %arg7[%c0_16, %c0_17] : memref<1x8xf32, #tpu.memory_space<vmem>>, vector<1x8xf32>
    %14 = vector.broadcast %13 : vector<1x8xf32> to vector<288x8xf32>
    %15 = arith.addf %12, %14 : vector<288x8xf32>
    %cst_18 = arith.constant 0.000000e+00 : f32
    %16 = vector.broadcast %cst_18 : f32 to vector<288x8xf32>
    %17 = arith.maximumf %15, %16 : vector<288x8xf32>
    %18 = arith.truncf %17 : vector<288x8xf32> to vector<288x8xbf16>
    %c0_19 = arith.constant 0 : index
    %c0_20 = arith.constant 0 : index
    %c0_21 = arith.constant 0 : index
    %19 = vector.load %arg5[%c0_19, %c0_20, %c0_21] : memref<1x288x3xbf16, #tpu.memory_space<vmem>>, vector<1x288x3xbf16>
    %20 = vector.shape_cast %19 : vector<1x288x3xbf16> to vector<288x3xbf16>
    %21 = vector.extract_strided_slice %20 {offsets = [0, 0], sizes = [288, 1], strides = [1, 1]} : vector<288x3xbf16> to vector<288x1xbf16>
    %22 = vector.broadcast %21 : vector<288x1xbf16> to vector<288x8xbf16>
    %23 = arith.mulf %18, %22 : vector<288x8xbf16>
    %cst_22 = arith.constant 0.000000e+00 : bf16
    %24 = vector.broadcast %cst_22 : bf16 to vector<1x8xbf16>
    %25 = vector.extract_strided_slice %23 {offsets = [0, 0], sizes = [287, 8], strides = [1, 1]} : vector<288x8xbf16> to vector<287x8xbf16>
    %26 = tpu.concatenate %24, %25 in 0 : vector<1x8xbf16>, vector<287x8xbf16> -> vector<288x8xbf16>
    %27 = vector.extract_strided_slice %20 {offsets = [0, 1], sizes = [288, 1], strides = [1, 1]} : vector<288x3xbf16> to vector<288x1xbf16>
    %28 = vector.broadcast %27 : vector<288x1xbf16> to vector<288x8xbf16>
    %29 = arith.mulf %26, %28 : vector<288x8xbf16>
    %30 = vector.extract_strided_slice %23 {offsets = [1, 0], sizes = [287, 8], strides = [1, 1]} : vector<288x8xbf16> to vector<287x8xbf16>
    %31 = tpu.concatenate %30, %24 in 0 : vector<287x8xbf16>, vector<1x8xbf16> -> vector<288x8xbf16>
    %32 = vector.extract_strided_slice %20 {offsets = [0, 2], sizes = [288, 1], strides = [1, 1]} : vector<288x3xbf16> to vector<288x1xbf16>
    %33 = vector.broadcast %32 : vector<288x1xbf16> to vector<288x8xbf16>
    %34 = arith.mulf %31, %33 : vector<288x8xbf16>
    %35 = tpu.concatenate %29, %23, %34 in 1 : vector<288x8xbf16>, vector<288x8xbf16>, vector<288x8xbf16> -> vector<288x24xbf16>
    %36 = vector.extract_strided_slice %35 {offsets = [0, 0], sizes = [256, 24], strides = [1, 1]} : vector<288x24xbf16> to vector<256x24xbf16>
    %37 = vector.extract_strided_slice %35 {offsets = [16, 0], sizes = [256, 24], strides = [1, 1]} : vector<288x24xbf16> to vector<256x24xbf16>
    %38 = vector.extract_strided_slice %35 {offsets = [32, 0], sizes = [256, 24], strides = [1, 1]} : vector<288x24xbf16> to vector<256x24xbf16>
    %c0_23 = arith.constant 0 : index
    %c0_24 = arith.constant 0 : index
    %39 = vector.load %arg9[%c0_23, %c0_24] : memref<24x32xbf16, #tpu.memory_space<vmem>>, vector<24x32xbf16>
    %cst_25 = arith.constant dense<0.000000e+00> : vector<256x32xf32>
    %40 = tpu.matmul %37, %39, %cst_25 {dimension_numbers = #tpu.dot_dimension_numbers<[1], [0], [0], [1], [0, 0, 1, 1], [], []>} : vector<256x24xbf16>, vector<24x32xbf16>, vector<256x32xf32> -> vector<256x32xf32>
    %c0_26 = arith.constant 0 : index
    %c0_27 = arith.constant 0 : index
    %41 = vector.load %arg8[%c0_26, %c0_27] : memref<24x32xbf16, #tpu.memory_space<vmem>>, vector<24x32xbf16>
    %cst_28 = arith.constant dense<0.000000e+00> : vector<256x32xf32>
    %42 = tpu.matmul %36, %41, %cst_28 {dimension_numbers = #tpu.dot_dimension_numbers<[1], [0], [0], [1], [0, 0, 1, 1], [], []>} : vector<256x24xbf16>, vector<24x32xbf16>, vector<256x32xf32> -> vector<256x32xf32>
    %43 = arith.addf %40, %42 : vector<256x32xf32>
    %c0_29 = arith.constant 0 : index
    %c0_30 = arith.constant 0 : index
    %44 = vector.load %arg10[%c0_29, %c0_30] : memref<24x32xbf16, #tpu.memory_space<vmem>>, vector<24x32xbf16>
    %cst_31 = arith.constant dense<0.000000e+00> : vector<256x32xf32>
    %45 = tpu.matmul %38, %44, %cst_31 {dimension_numbers = #tpu.dot_dimension_numbers<[1], [0], [0], [1], [0, 0, 1, 1], [], []>} : vector<256x24xbf16>, vector<24x32xbf16>, vector<256x32xf32> -> vector<256x32xf32>
    %46 = arith.addf %43, %45 : vector<256x32xf32>
    %c0_32 = arith.constant 0 : index
    %c0_33 = arith.constant 0 : index
    %47 = vector.load %arg11[%c0_32, %c0_33] : memref<1x32xf32, #tpu.memory_space<vmem>>, vector<1x32xf32>
    %48 = vector.broadcast %47 : vector<1x32xf32> to vector<256x32xf32>
    %49 = arith.addf %46, %48 : vector<256x32xf32>
    %cst_34 = arith.constant 0.000000e+00 : f32
    %50 = vector.broadcast %cst_34 : f32 to vector<256x32xf32>
    %51 = arith.maximumf %49, %50 : vector<256x32xf32>
    %52 = arith.truncf %51 : vector<256x32xf32> to vector<256x32xbf16>
    %c0_35 = arith.constant 0 : index
    %c0_36 = arith.constant 0 : index
    %c0_37 = arith.constant 0 : index
    %53 = vector.load %arg12[%c0_35, %c0_36, %c0_37] : memref<1x256x32xbf16, #tpu.memory_space<vmem>>, vector<1x256x32xbf16>
    %54 = vector.shape_cast %53 : vector<1x256x32xbf16> to vector<256x32xbf16>
    %55 = vector.shape_cast %52 : vector<256x32xbf16> to vector<1x256x32xbf16>
    tpu.vector_store %arg12[%c0_35, %c0_36, %c0_37], %55 {strides = array<i32>} : memref<1x256x32xbf16, #tpu.memory_space<vmem>>, vector<1x256x32xbf16>,
    return
  }
  func.func @transform_0(%arg0: i32, %arg1: i32) -> (i32, i32, i32) {
    %c0_i32 = arith.constant 0 : i32
    %c0_i32_0 = arith.constant 0 : i32
    return %arg0, %arg1, %c0_i32 : i32, i32, i32
  }
  func.func @transform_1(%arg0: i32, %arg1: i32) -> (i32, i32, i32) {
    %c16_i32 = arith.constant 16 : i32
    %0 = arith.muli %arg1, %c16_i32 : i32
    %c1_i32 = arith.constant 1 : i32
    %1 = arith.subi %0, %c1_i32 : i32
    %c0_i32 = arith.constant 0 : i32
    %2 = arith.maxsi %1, %c0_i32 : i32
    %c0_i32_0 = arith.constant 0 : i32
    %c0_i32_1 = arith.constant 0 : i32
    return %arg0, %2, %c0_i32_0 : i32, i32, i32
  }
  func.func @transform_2(%arg0: i32, %arg1: i32) -> (i32, i32, i32) {
    %c16_i32 = arith.constant 16 : i32
    %0 = arith.muli %arg1, %c16_i32 : i32
    %c16_i32_0 = arith.constant 16 : i32
    %1 = arith.addi %0, %c16_i32_0 : i32
    %c15_i32 = arith.constant 15 : i32
    %2 = arith.minsi %1, %c15_i32 : i32
    %c0_i32 = arith.constant 0 : i32
    %c0_i32_1 = arith.constant 0 : i32
    return %arg0, %2, %c0_i32 : i32, i32, i32
  }
  func.func @transform_3(%arg0: i32, %arg1: i32) -> (i32, i32, i32) {
    %c0_i32 = arith.constant 0 : i32
    %c0_i32_0 = arith.constant 0 : i32
    %c0_i32_1 = arith.constant 0 : i32
    return %arg1, %c0_i32, %c0_i32_0 : i32, i32, i32
  }
  func.func @transform_4(%arg0: i32, %arg1: i32) -> (i32, i32) {
    %c0_i32 = arith.constant 0 : i32
    %c0_i32_0 = arith.constant 0 : i32
    %c0_i32_1 = arith.constant 0 : i32
    return %c0_i32, %c0_i32_0 : i32, i32
  }
  func.func @transform_5(%arg0: i32, %arg1: i32) -> (i32, i32) {
    %c0_i32 = arith.constant 0 : i32
    %c0_i32_0 = arith.constant 0 : i32
    %c0_i32_1 = arith.constant 0 : i32
    return %c0_i32, %c0_i32_0 : i32, i32
  }
  func.func @transform_6(%arg0: i32, %arg1: i32) -> (i32, i32) {
    %c0_i32 = arith.constant 0 : i32
    %c0_i32_0 = arith.constant 0 : i32
    %c0_i32_1 = arith.constant 0 : i32
    return %c0_i32, %c0_i32_0 : i32, i32
  }
  func.func @transform_7(%arg0: i32, %arg1: i32) -> (i32, i32) {
    %c0_i32 = arith.constant 0 : i32
    %c0_i32_0 = arith.constant 0 : i32
    %c0_i32_1 = arith.constant 0 : i32
    return %c0_i32, %c0_i32_0 : i32, i32
  }
  func.func @transform_8(%arg0: i32, %arg1: i32) -> (i32, i32) {
    %c0_i32 = arith.constant 0 : i32
    %c0_i32_0 = arith.constant 0 : i32
    %c0_i32_1 = arith.constant 0 : i32
    return %c0_i32, %c0_i32_0 : i32, i32
  }
  func.func @transform_9(%arg0: i32, %arg1: i32) -> (i32, i32) {
    %c0_i32 = arith.constant 0 : i32
    %c0_i32_0 = arith.constant 0 : i32
    %c0_i32_1 = arith.constant 0 : i32
    return %c0_i32, %c0_i32_0 : i32, i32
  }
  func.func @transform_10(%arg0: i32, %arg1: i32) -> (i32, i32, i32) {
    %c0_i32 = arith.constant 0 : i32
    %c0_i32_0 = arith.constant 0 : i32
    return %arg0, %arg1, %c0_i32 : i32, i32, i32
  }
}

</mosaic_0001>

<bundles_post_ra>
// kernel: tpu_custom_call.1
= control target key start
LH: loop header
LB: loop body
LE: loop exit
PB: predicated region body
PF: predicated region fallthrough
CT: control target
= control target key end

     0   :  { %s4828_s13 = smov 0   ;;  %s4830_s14 = smov 0   ;;  %s6447_s0 = inlined_call_operand.vmem [shape: bf16[2,256,16], index: 0, kind: input, shape index: {}]   ;;  %s6448_s1 = inlined_call_operand.vmem [shape: bf16[2,256,16], index: 1, kind: input, shape index: {}]   ;;  %s6449_s2 = inlined_call_operand.vmem [shape: bf16[2,256,16], index: 2, kind: input, shape index: {}]   ;;  %s6450_s3 = inlined_call_operand.vmem [shape: bf16[1,288,3], index: 3, kind: input, shape index: {}]   ;;  %s6451_s4 = inlined_call_operand.vmem [shape: bf16[16,8], index: 4, kind: input, shape index: {}]   ;;  %s6452_s5 = inlined_call_operand.vmem [shape: f32[1,8], index: 5, kind: input, shape index: {}]   ;;  %s6453_s6 = inlined_call_operand.vmem [shape: bf16[24,32], index: 6, kind: input, shape index: {}]   ;;  %s6454_s7 = inlined_call_operand.vmem [shape: bf16[24,32], index: 7, kind: input, shape index: {}]   ;;  %s6455_s8 = inlined_call_operand.vmem [shape: bf16[24,32], index: 8, kind: input, shape index: {}]   ;;  %s6456_s9 = inlined_call_operand.vmem [shape: f32[1,32], index: 9, kind: input, shape index: {}]   ;;  %s6457_s10 = inlined_call_operand.vmem [shape: bf16[2,256,32], index: 10, kind: output, shape index: {}]  }
   0x1   :  { %s4832_s15 = smov 0  }
   0x2 LB: > { %s32_s16 = sadd.s32 1, %s4759_s14  ;;  %p4127_p0 = scmp.ge.s32.totalorder %s4763_s15, 1  ;;  %s4763_s15 = sphi %s4832_s15, %s20_s15   ;;  %s4759_s14 = sphi %s4830_s14, %s6533_s14   ;;  %s4755_s13 = sphi %s4828_s13, %s6532_s13  }
   0x3   : > { %p34_p1 = scmp.ge.s32.totalorder %s32_s16, 2  ;;  %p409_p2 = scmp.lt.s32.totalorder %s4763_s15, 3 }
   0x5   : > { %s6535_s16 = smov (%p34_p1, %s32_s16), 0  ;;  %p410_p3 = pnand %p4127_p0, %p409_p2 }
   0x7   : > { %413 = sbr.rel (%p410_p3) target bundleno = 806 (0x326), region = 60 }
   0xe   : > { %v4849_v0 = vld [vmem:[%s6450_s3 + $0x8] sm:$0xf]  ;;  %v4854_v1 = vld [vmem:[%s6450_s3] sm:$0xf]  ;;  %v4765_v2 = vmov 0   ;;  %p487_p4 = scmp.lt.s32.totalorder %s4755_s13, 1 }
   0xf   : > { %4684 = vset.pattern.permute.xlu1 %v4765_v2  ;;  %4683 = vset.pattern.permute.xlu0 %v4765_v2  ;;  %v4712_v3 = vld [vmem:[%s6451_s4] sm:$0xff]   ;;  %v4766_v4 = vmov 0.0   ;;  %v4866_v5 = vld [vmem:[%s6450_s3 + $0xc] sm:$0xf]  ;;  %vm4767_vm0 = vmmov 0   ;;  %vm563_vm1 = vcmask 130048  }
  0x10   : > { %1139 = vperm.xlu1 %4684, %v4849_v0   ;;  %1115 = vperm.xlu0 %4683, %v4854_v1   ;;  %v4871_v6 = vld [vmem:[%s6450_s3 + $0x4] sm:$0xf]  ;;  %s6537_s13 = smov (!%p487_p4, %s4755_s13), 1  ;;  %v4890_v7 = vld [vmem:[%s6450_s3 + $0x14] sm:$0xf]  ;;  %v6460_v18 = vmov 2  }
  0x11   : > { %4430 = vmatprep.subr.bf16.mxu1 %v4766_v4  ;;  %4432 = vmatprep.mubr.msk.bf16.mxu1 %vm4767_vm0, %v4766_v4  ;;  %s4875_s27 = sshll.u32 %s6537_s13, 7  ;;  %v4895_v8 = vld [vmem:[%s6450_s3 + $0x10] sm:$0xf]  ;;  %v4904_v11 = vld [vmem:[%s6450_s3 + $0x1c] sm:$0xf]  ;;  %v6458_v54 = vmov 1  }
  0x12   : > { %4431 = vmatpush3.bf16.msra.mxu1 %v4712_v3  ;;  %4470 = vmatprep.subr.bf16.mxu0 %v4766_v4  ;;  %s4881_s30 = scalar_lea.vmem %s6447_s0, %s4875_s27  ;;  %s508_s17 = scalar_lea.vmem %s6448_s1, %s4875_s27  ;;  %v4909_v12 = vld [vmem:[%s6450_s3 + $0x18] sm:$0xf]  ;;  %v4915_v13 = vld [vmem:[%s6450_s3 + $0x24] sm:$0xf]  ;;  %v4924_v16 = vld [vmem:[%s6450_s3 + $0x20] sm:$0xf] }
  0x13   : > { %4436 = vmatprep.subr.bf16.mxu1 %v4712_v3  ;;  %4471 = vmatpush3.bf16.msra.mxu0 %v4712_v3  ;;  %v4713_v9 = vld [vmem:[%s508_s17] sm:$0xff]   ;;  %v4715_v14 = vld [vmem:[%s4881_s30 + $0x8] sm:$0xff]   ;;  %v4716_v15 = vld [vmem:[%s4881_s30 + $0x10] sm:$0xff]   ;;  %s4320_s17 = sadd.s32 120, %s4875_s27  ;;  %vm2358_vm2 = vsmask.f32 7424  ;;  %s6343_s13 = scalar_lea.vmem %s6457_s10, %s4875_s27 }
  0x14   : > { %1151 = vperm.xlu1 %4684, %v4866_v5   ;;  %1127 = vperm.xlu0 %4683, %v4871_v6   ;;  %v4714_v10 = vld [vmem:[%s4881_s30] sm:$0xff]   ;;  %v4933_v17 = vld [vmem:[%s6450_s3 + $0x2c] sm:$0xf]  ;;  %v4717_v19 = vld [vmem:[%s4881_s30 + $0x18] sm:$0xff]   ;;  %s526_s21 = scalar_lea.vmem %s6449_s2, %s4320_s17  ;;  %s4771_s25 = smov 8   ;;  %vm3202_vm4 = vcmask 1043456  }
  0x15   : > { %4472 = vmatprep.mubr.msk.bf16.mxu0 %vm4767_vm0, %v4766_v4  ;;  %4433 = vmatmul.mubr.msk.bf16.vlgmr.msra.gmra.mrb[0].mxu1 %vm563_vm1, %v4713_v9  ;;  %v4943_v20 = vld [vmem:[%s6450_s3 + $0x3c] sm:$0xf]  ;;  %v4718_v21 = vld [vmem:[%s4881_s30 + $0x20] sm:$0xff]   ;;  %v4955_v22 = vld [vmem:[%s6450_s3 + $0x4c] sm:$0xf]  ;;  %s4772_s26 = smov 16  }
  0x16   : > { %4437 = vmatpush3.bf16.msra.mxu1 %v4712_v3  ;;  %4438 = vmatprep.mubr.msk.bf16.mxu1 %vm563_vm1, %v4714_v10  ;;  %v4730_v23 = vld [vmem:[%s526_s21] sm:$0xff]   ;;  %v4961_v24 = vld [vmem:[%s6450_s3 + $0x28] sm:$0xf]  ;;  %v4970_v26 = vld [vmem:[%s6450_s3 + $0x5c] sm:$0xf]  ;;  %vm3063_vm5 = vcmask 64512  }
  0x17   : > { %v4719_v25 = vld [vmem:[%s4881_s30 + $0x28] sm:$0xff]   ;;  %4473 = vmatmul.mubr.msk.bf16.vlgmr.msra.gmra.mrb[0].mxu0 %vm563_vm1, %v4730_v23  ;;  %v4720_v27 = vld [vmem:[%s4881_s30 + $0x30] sm:$0xff]   ;;  %v4721_v31 = vld [vmem:[%s4881_s30 + $0x38] sm:$0xff]   ;;  %vm1671_vm3 = vsmask.f32 256  ;;  %vm3169_vm6 = vcmask 195584  }
  0x18   : > { %1175 = vperm.xlu1 %4684, %v4890_v7   ;;  %1163 = vperm.xlu0 %4683, %v4895_v8   ;;  %v4977_v28 = vld [vmem:[%s6450_s3 + $0x30] sm:$0xf]  ;;  %v4986_v29 = vld [vmem:[%s6450_s3 + $0x6c] sm:$0xf]  ;;  %v4991_v30 = vld [vmem:[%s6450_s3 + $0x34] sm:$0xf] }
  0x19   : > { %v4722_v32 = vld [vmem:[%s4881_s30 + $0x40] sm:$0xff]   ;;  %v5000_v33 = vld [vmem:[%s6450_s3 + $0x7c] sm:$0xf]  ;;  %v1112_v34 = vld [vmem:[%s6450_s3 + $0x8c] sm:$0xf]  ;;  %vm1833_vm7 = vcmask 1040384  }
  0x1a   : > { %v4723_v35 = vld [vmem:[%s4881_s30 + $0x48] sm:$0xff]   ;;  %v4724_v36 = vld [vmem:[%s4881_s30 + $0x50] sm:$0xff]   ;;  %v5018_v37 = vld [vmem:[%s6450_s3 + $0x38] sm:$0xf]  ;;  %vm2430_vm9 = vcmask 1047552   ;;  %vm3951_vm11 = vcmask 257024  }
  0x1b   : > { %v4725_v38 = vld [vmem:[%s4881_s30 + $0x58] sm:$0xff]   ;;  %v5028_v39 = vld [vmem:[%s6450_s3 + $0x40] sm:$0xf]  ;;  %v5037_v41 = vld [vmem:[%s6450_s3 + $0x44] sm:$0xf] }
  0x1c   : > { %1199 = vperm.xlu1 %4684, %v4904_v11   ;;  %1187 = vperm.xlu0 %4683, %v4909_v12   ;;  %v4726_v40 = vld [vmem:[%s4881_s30 + $0x60] sm:$0xff]   ;;  %v4727_v42 = vld [vmem:[%s4881_s30 + $0x68] sm:$0xff]   ;;  %v4728_v43 = vld [vmem:[%s4881_s30 + $0x70] sm:$0xff]  }
  0x1d   : > { %4439 = vmatmul.mubr.msk.bf16.vlgmr.msra.gmra.mrb[4].mxu1 %vm563_vm1, %v4715_v14  ;;  %v4729_v44 = vld [vmem:[%s4881_s30 + $0x78] sm:$0xff]   ;;  %v5056_v45 = vld [vmem:[%s6450_s3 + $0x48] sm:$0xf]  ;;  %v5065_v46 = vld [vmem:[%s6450_s3 + $0x50] sm:$0xf] }
  0x1e   : > { %4442 = vmatprep.mubr.msk.bf16.mxu1 %vm563_vm1, %v4716_v15  ;;  %v1098_v47 = vld [vmem:[%s6450_s3 + $0x54] sm:$0xf]  ;;  %v5078_v48 = vld [vmem:[%s6450_s3 + $0x58] sm:$0xf]  ;;  %v1102_v49 = vld [vmem:[%s6450_s3 + $0x64] sm:$0xf] }
  0x1f   : > { %v5089_v50 = vld [vmem:[%s6450_s3 + $0x68] sm:$0xf]  ;;  %v5095_v51 = vld [vmem:[%s6450_s3 + $0x60] sm:$0xf]  ;;  %v1106_v52 = vld [vmem:[%s6450_s3 + $0x74] sm:$0xf] }
  0x20   : > { %1223 = vperm.xlu1 %4684, %v4915_v13   ;;  %1211 = vperm.xlu0 %4683, %v4924_v16   ;;  %v5105_v53 = vld [vmem:[%s6450_s3 + $0x84] sm:$0xf]  ;;  %v5119_v55 = vld [vmem:[%s6450_s3 + $0x70] sm:$0xf]  ;;  %v5145_v62 = vld [vmem:[%s6450_s3 + $0x78] sm:$0xf] }
  0x21   : > { %6480 = vst [vmem:[#allocation2_spill] sm:$0xff] %v5119_v55  ;;  %6481 = vst [vmem:[#allocation3_spill] sm:$0xff] %v5145_v62 }
  0x22   : > { %vm1834_vm8 = vmand %vm1833_vm7, %vm1671_vm3 }
  0x23   : > { %vm2431_vm10 = vmand %vm2430_vm9, %vm2358_vm2 }
  0x24   : > { %4685 = vset.pattern.permute.xlu1 %v6460_v18  ;;  %1247 = vperm.xlu0 %4683, %v4933_v17  }
  0x25   : > { %2467 = vperm.xlu1 %4685, %v4866_v5   ;;  %4443 = vmatmul.mubr.msk.bf16.gmra.mrb[8].mxu1 %vm563_vm1, %v4717_v19 }
  0x26   : > { %4446 = vmatprep.mubr.msk.bf16.mxu1 %vm563_vm1, %v4718_v21 }
  0x28   : > { %1295 = vperm.xlu0 %4683, %v4943_v20  }
  0x29   : > { %2478 = vperm.xlu1 %4685, %v4895_v8  }
  0x2c   : > { %1343 = vperm.xlu0 %4683, %v4955_v22  }
  0x2d   : > { %4686 = vset.pattern.permute.xlu1 %v4765_v2  ;;  %4447 = vmatmul.mubr.msk.bf16.gmra.mrb[12].mxu1 %vm563_vm1, %v4719_v25 }
  0x2e   : > { %1235 = vperm.xlu1 %4686, %v4961_v24   ;;  %4450 = vmatprep.mubr.msk.bf16.mxu1 %vm563_vm1, %v4720_v27 }
  0x30   : > { %1391 = vperm.xlu0 %4683, %v4970_v26  }
  0x32   : > { %1259 = vperm.xlu1 %4686, %v4977_v28  }
  0x34   : > { %1439 = vperm.xlu0 %4683, %v4986_v29  }
  0x35   : > { %4451 = vmatmul.mubr.msk.bf16.gmra.mrb[16].mxu1 %vm563_vm1, %v4721_v31 }
  0x36   : > { %1271 = vperm.xlu1 %4686, %v4991_v30   ;;  %4454 = vmatprep.mubr.msk.bf16.mxu1 %vm563_vm1, %v4722_v32 }
  0x38   : > { %1487 = vperm.xlu0 %4683, %v5000_v33  }
  0x3a   : > { %4687 = vset.pattern.permute.xlu1 %v6460_v18 }
  0x3b   : > { %2511 = vperm.xlu1 %4687, %v4904_v11  }
  0x3c   : > { %1535 = vperm.xlu0 %4683, %v1112_v34  }
  0x3d   : > { %4455 = vmatmul.mubr.msk.bf16.gmra.mrb[20].mxu1 %vm563_vm1, %v4723_v35 }
  0x3e   : > { %4458 = vmatprep.mubr.msk.bf16.mxu1 %vm563_vm1, %v4724_v36 }
  0x3f   : > { %2522 = vperm.xlu1 %4687, %v4924_v16  }
  0x40   : > { %4699 = vset.pattern.permute.xlu0 %v6460_v18 }
  0x41   : > { %2456 = vperm.xlu0 %4699, %v4849_v0  }
  0x43   : > { %4688 = vset.pattern.permute.xlu1 %v4765_v2 }
  0x44   : > { %1283 = vperm.xlu1 %4688, %v5018_v37  }
  0x45   : > { %2489 = vperm.xlu0 %4699, %v4890_v7   ;;  %4459 = vmatmul.mubr.msk.bf16.gmra.mrb[24].mxu1 %vm563_vm1, %v4725_v38 }
  0x46   : > { %4462 = vmatprep.mubr.msk.bf16.mxu1 %vm563_vm1, %v4726_v40 }
  0x48   : > { %1307 = vperm.xlu1 %4688, %v5028_v39  }
  0x49   : > { %2500 = vperm.xlu0 %4699, %v4909_v12  }
  0x4c   : > { %1319 = vperm.xlu1 %4688, %v5037_v41  }
  0x4d   : > { %2533 = vperm.xlu0 %4699, %v4915_v13   ;;  %4463 = vmatmul.mubr.msk.bf16.gmra.mrb[28].mxu1 %vm563_vm1, %v4727_v42  ;;  %v4770_v42 = vmov 839922192  }
  0x4e   : > { %4466 = vmatprep.mubr.msk.bf16.mxu1 %vm563_vm1, %v4728_v43  ;;  %v1121_v43 = vlaneseq }
  0x50   : > { %4689 = vset.pattern.permute.xlu1 %v6460_v18 }
  0x51   : > { %2555 = vperm.xlu1 %4689, %v4933_v17   ;;  %2544 = vperm.xlu0 %4699, %v4961_v24  }
  0x55   : > { %2566 = vperm.xlu1 %4689, %v4977_v28   ;;  %2577 = vperm.xlu0 %4699, %v4991_v30  }
  0x56   : > { %4467 = vmatmul.mubr.msk.bf16.gmra.mrb[32].mxu1 %vm563_vm1, %v4729_v44 }
  0x59   : > { %4690 = vset.pattern.permute.xlu1 %v4765_v2  ;;  %2588 = vperm.xlu0 %4699, %v5018_v37  }
  0x5a   : > { %1331 = vperm.xlu1 %4690, %v5056_v45  }
  0x5d   : > { %2621 = vperm.xlu0 %4699, %v5037_v41  }
  0x5e   : > { %1355 = vperm.xlu1 %4690, %v5065_v46  }
  0x61   : > { %2632 = vperm.xlu0 %4699, %v5056_v45  }
  0x62   : > { %1367 = vperm.xlu1 %4690, %v1098_v47  }
  0x65   : > { %2665 = vperm.xlu0 %4699, %v1098_v47  }
  0x66   : > { %4691 = vset.pattern.permute.xlu1 %v6460_v18 }
  0x67   : > { %2599 = vperm.xlu1 %4691, %v4943_v20  }
  0x69   : > { %2676 = vperm.xlu0 %4699, %v5078_v48  }
  0x6b   : > { %2610 = vperm.xlu1 %4691, %v5028_v39  }
  0x6d   : > { %2709 = vperm.xlu0 %4699, %v1102_v49  }
  0x6f   : > { %4692 = vset.pattern.permute.xlu1 %v4765_v2 }
  0x70   : > { %1379 = vperm.xlu1 %4692, %v5078_v48  }
  0x71   : > { %2720 = vperm.xlu0 %4699, %v5089_v50  }
  0x74   : > { %1403 = vperm.xlu1 %4692, %v5095_v51  }
  0x75   : > { %2753 = vperm.xlu0 %4699, %v1106_v52  }
  0x78   : > { %1415 = vperm.xlu1 %4692, %v1102_v49  }
  0x79   : > { %2797 = vperm.xlu0 %4699, %v5105_v53  }
  0x7c   : > { %4693 = vset.pattern.permute.xlu1 %v6460_v18 }
  0x7d   : > { %2643 = vperm.xlu1 %4693, %v4955_v22   ;;  %2434 = vperm.xlu0 %4699, %v4854_v1   ;;  %v5157_v1 = vld [vmem:[%s6450_s3 + $0x80] sm:$0xf] }
  0x7e   : > { %6482 = vst [vmem:[#allocation4_spill] sm:$0xff] %v5157_v1 }
  0x81   : > { %2654 = vperm.xlu1 %4693, %v5065_v46   ;;  %4704 = vset.pattern.permute.xlu0 %v6458_v54 }
  0x82   : > { %1859 = vperm.xlu0 %4704, %v4849_v0  }
  0x85   : > { %4694 = vset.pattern.permute.xlu1 %v4765_v2 }
  0x86   : > { %1427 = vperm.xlu1 %4694, %v5089_v50   ;;  %1903 = vperm.xlu0 %4704, %v4909_v12  }
  0x8a   : > { %1451 = vperm.xlu1 %4694, %v5119_v55   ;;  %1936 = vperm.xlu0 %4704, %v4915_v13  }
  0x8e   : > { %1463 = vperm.xlu1 %4694, %v1106_v52   ;;  %1958 = vperm.xlu0 %4704, %v4933_v17   ;;  %v1111_v17 = vld [vmem:[%s6450_s3 + $0x88] sm:$0xf] }
  0x8f   : > { %v5124_v56 = vpop.permute.xlu1 %1139  ;;  %v5126_v57 = vpop.permute.xlu0 %1115 }
  0x92   : > { %4695 = vset.pattern.permute.xlu1 %v6460_v18  ;;  %1980 = vperm.xlu0 %4704, %v4991_v30  }
  0x93   : > { %2687 = vperm.xlu1 %4695, %v4970_v26   ;;  %v5131_v58 = vpop.permute.xlu1 %1151  ;;  %v5133_v59 = vpop.permute.xlu0 %1127 }
  0x96   : > { %2002 = vperm.xlu0 %4704, %v4943_v20  }
  0x97   : > { %2698 = vperm.xlu1 %4695, %v5095_v51   ;;  %v5137_v60 = vpop.permute.xlu1 %1175  ;;  %v5140_v61 = vpop.permute.xlu0 %1163 }
  0x9a   : > { %2024 = vperm.xlu0 %4704, %v5037_v41  }
  0x9b   : > { %4696 = vset.pattern.permute.xlu1 %v4765_v2  ;;  %v5148_v63 = vpop.permute.xlu1 %1199  ;;  %v5151_v0 = vpop.permute.xlu0 %1187 }
  0x9c   : > { %1475 = vperm.xlu1 %4696, %v5145_v62  }
  0x9e   : > { %2046 = vperm.xlu0 %4704, %v4955_v22  }
  0x9f   : > { %v5159_v3 = vpop.permute.xlu1 %1223  ;;  %v5162_v4 = vpop.permute.xlu0 %1211 }
  0xa0   : > { %1499 = vperm.xlu1 %4696, %v5157_v1  }
  0xa2   : > { %2068 = vperm.xlu0 %4704, %v1098_v47  }
  0xa3   : > { %v5168_v10 = vpop.permute.xlu0 %1247 }
  0xa4   : > { %1511 = vperm.xlu1 %4696, %v5105_v53   ;;  %v5166_v9 = vpop.permute.xlu1 %2467 }
  0xa6   : > { %2090 = vperm.xlu0 %4704, %v4970_v26  }
  0xa7   : > { %v5174_v13 = vpop.permute.xlu0 %1295 }
  0xa8   : > { %4697 = vset.pattern.permute.xlu1 %v6460_v18  ;;  %v5172_v12 = vpop.permute.xlu1 %2478 }
  0xa9   : > { %2731 = vperm.xlu1 %4697, %v4986_v29  }
  0xaa   : > { %2112 = vperm.xlu0 %4704, %v1102_v49   ;;  %v1122_v49 = vshrl.u32 %v1121_v43, 7  ;;  %v5273_v43 = vld [vmem:[%s6452_s5] ss:$0 sm:$0xff] }
  0xab   : > { %v5177_v14 = vpop.permute.xlu0 %1343 }
  0xad   : > { %2742 = vperm.xlu1 %4697, %v5119_v55   ;;  %v5180_v15 = vpop.permute.xlu1 %1235 }
  0xae   : > { %2134 = vperm.xlu0 %4704, %v4986_v29  }
  0xaf   : > { %v5186_v19 = vpop.permute.xlu0 %1391 }
  0xb1   : > { %4698 = vset.pattern.permute.xlu1 %v4765_v2  ;;  %v5189_v20 = vpop.permute.xlu1 %1259 }
  0xb2   : > { %1523 = vperm.xlu1 %4698, %v1111_v17   ;;  %2156 = vperm.xlu0 %4704, %v1106_v52  }
  0xb3   : > { %v5191_v21 = vpop.permute.xlu0 %1439 }
  0xb5   : > { %v5193_v22 = vpop.permute.xlu1 %1271 }
  0xb6   : > { %4700 = vset.pattern.permute.xlu1 %v6460_v18  ;;  %2178 = vperm.xlu0 %4704, %v5000_v33  }
  0xb7   : > { %2764 = vperm.xlu1 %4700, %v5145_v62   ;;  %v5198_v23 = vpop.permute.xlu0 %1487 }
  0xba   : > { %v5200_v25 = vpop.permute.xlu1 %2511 }
  0xbb   : > { %2775 = vperm.xlu1 %4700, %v5000_v33   ;;  %v5203_v2 = vpop.permute.xlu0 %1535 }
  0xbe   : > { %v5205_v26 = vpop.permute.xlu1 %2522 }
  0xbf   : > { %4701 = vset.pattern.permute.xlu1 %v6458_v54 }
  0xc0   : > { %1870 = vperm.xlu1 %4701, %v4866_v5   ;;  %v5209_v27 = vpop.permute.xlu0 %2456 }
  0xc3   : > { %v5211_v29 = vpop.permute.xlu1 %1283 }
  0xc4   : > { %4702 = vset.pattern.permute.xlu1 %v6460_v18  ;;  %v5214_v30 = vpop.permute.xlu0 %2489 }
  0xc5   : > { %2786 = vperm.xlu1 %4702, %v5157_v1  }
  0xc7   : > { %v5217_v31 = vpop.permute.xlu1 %1307 }
  0xc8   : > { %v5219_v32 = vpop.permute.xlu0 %2500 }
  0xc9   : > { %4703 = vset.pattern.permute.xlu1 %v6458_v54 }
  0xca   : > { %1881 = vperm.xlu1 %4703, %v4895_v8  }
  0xcb   : > { %v5223_v33 = vpop.permute.xlu1 %1319 }
  0xcc   : > { %v5225_v5 = vpop.permute.xlu0 %2533 }
  0xce   : > { %1892 = vperm.xlu1 %4703, %v4890_v7  }
  0xd0   : > { %v5228_v34 = vpop.permute.xlu1 %2555  ;;  %v5230_v35 = vpop.permute.xlu0 %2544 }
  0xd2   : > { %4705 = vset.pattern.permute.xlu1 %v6460_v18 }
  0xd3   : > { %2445 = vperm.xlu1 %4705, %v4871_v6   ;;  %v1119_v6 = vunpack.c.l.s4 %v4770_v42 }
  0xd4   : > { %v5234_v36 = vpop.permute.xlu1 %2566  ;;  %v5236_v38 = vpop.permute.xlu0 %2577 }
  0xd5   : > { %v1120_v47 = vunpack.c.0.s8 %v1119_v6 }
  0xd7   : > { %4706 = vset.pattern.permute.xlu1 %v6458_v54  ;;  %v5255_v52 = vsub.s32 %v1120_v47, %v1122_v49 }
  0xd8   : > { %1914 = vperm.xlu1 %4706, %v4904_v11   ;;  %v5242_v40 = vpop.permute.xlu0 %2588 }
  0xd9   : > { %v5240_v8 = vpop.permute.xlu1 %1331  ;;  %v1160_v17 = vrot.slane %v5131_v58, %v5255_v52  ;;  %v1136_v42 = vrot.slane %v5133_v59, %v5255_v52  ;;  %v1184_v6 = vrot.slane %v5137_v60, %v5255_v52  ;;  %v1196_v59 = vrot.slane %v5151_v0, %v5255_v52 }
  0xda   : > { %v1220_v47 = vrot.slane %v5162_v4, %v5255_v52  ;;  %v1256_v0 = vrot.slane %v5168_v10, %v5255_v52  ;;  %v1280_v4 = vrot.slane %v5193_v22, %v5255_v52  ;;  %v2465_v10 = vrot.slane %v5209_v27, %v5255_v52 }
  0xdb   : > { %v1268_v22 = vrot.slane %v5189_v20, %v5255_v52  ;;  %v1352_v27 = vrot.slane %v5177_v14, %v5255_v52  ;;  %v2520_v20 = vrot.slane %v5200_v25, %v5255_v52  ;;  %v2509_v25 = vrot.slane %v5219_v32, %v5255_v52 }
  0xdc   : > { %1925 = vperm.xlu1 %4706, %v4924_v16   ;;  %v5247_v41 = vpop.permute.xlu0 %2621 }
  0xdd   : > { %v5245_v7 = vpop.permute.xlu1 %1355 }
  0xe0   : > { %1947 = vperm.xlu1 %4706, %v4961_v24   ;;  %v5252_v11 = vpop.permute.xlu0 %2632  ;;  %v1124_v24 = vrot.slane %v5126_v57, %v5255_v52  ;;  %v1208_v57 = vrot.slane %v5148_v63, %v5255_v52 }
  0xe1   : > { %v5250_v44 = vpop.permute.xlu1 %1367 }
  0xe2   : > { %v4174_v63 = vcombine.low %v1124_v24, %v1136_v42  ;;  %v5299_v55 = vcombine.low %v1196_v59, %v1208_v57  ;;  %v1304_v24 = vrot.slane %v5174_v13, %v5255_v52  ;;  %v5331_v57 = vcombine.low %v1268_v22, %v1280_v4 }
  0xe3   : > { %v2531_v59 = vrot.slane %v5205_v26, %v5255_v52  ;;  %v1328_v26 = vrot.slane %v5223_v33, %v5255_v52 }
  0xe4   : > { %1969 = vperm.xlu1 %4706, %v4977_v28   ;;  %v1172_v28 = vrot.slane %v5140_v61, %v5255_v52  ;;  %v5275_v58 = vpop.permute.xlu0 %2665  ;;  %v1232_v61 = vrot.slane %v5159_v3, %v5255_v52  ;;  %v1244_v3 = vrot.slane %v5180_v15, %v5255_v52  ;;  %v1292_v15 = vrot.slane %v5211_v29, %v5255_v52 }
  0xe6   : > { %v5257_v16 = vpop.permute.xlu1 %2599  ;;  %v5293_v1 = vcombine.low %v1172_v28, %v1184_v6  ;;  %v5325_v29 = vcombine.low %v1244_v3, %v1256_v0  ;;  %v1400_v28 = vrot.slane %v5186_v19, %v5255_v52  ;;  %v2498_v3 = vrot.slane %v5214_v30, %v5255_v52 }
  0xe8   : > { %1991 = vperm.xlu1 %4706, %v5018_v37   ;;  %v1148_v37 = vrot.slane %v5124_v56, %v5255_v52  ;;  %v601_v49 = vpop.f32.mrb[0].mxu1  ;;  %v5314_v6 = vpop.permute.xlu0 %2676 }
  0xe9   : > { %v987_v18 = vadd.f32 %v5273_v43, %v601_v49  ;;  %v4434_v56 = vpop.f32.mrb[1].mxu1 }
  0xea   : > { %v5283_v60 = vpop.permute.xlu1 %2610  ;;  %v5289_v54 = vcombine.low %v1148_v37, %v1160_v17  ;;  %v604_v62 = vpop.f32.mrb[2].mxu1 }
  0xeb   : > { %v1023_v17 = vmax.f32 %v987_v18, 0.0  ;;  %v988_v37 = vadd.f32 %v5273_v43, %v604_v62  ;;  %v4435_v49 = vpop.f32.mrb[3].mxu1  ;;  %v2476_v18 = vrot.slane %v5166_v9, %v5255_v52  ;;  %v2487_v62 = vrot.slane %v5172_v12, %v5255_v52 }
  0xec   : > { %2013 = vperm.xlu1 %4706, %v5028_v39   ;;  %v5304_v39 = vcombine.low %v1220_v47, %v1232_v61  ;;  %v5343_v47 = vcombine.low %v1292_v15, %v1304_v24  ;;  %v2542_v49 = vrot.slane %v5225_v5, %v5255_v52  ;;  %v2564_v24 = vrot.slane %v5228_v34, %v5255_v52  ;;  %v5362_v32 = vpop.permute.xlu0 %2709 }
  0xed   : > { %v1024_v13 = vmax.f32 %v988_v37, 0.0  ;;  %v5341_v61 = vcombine.low %v2465_v10, %v2476_v18  ;;  %v2575_v5 = vrot.slane %v5234_v36, %v5255_v52  ;;  %v2586_v34 = vrot.slane %v5236_v38, %v5255_v52 }
  0xee   : > { %v5386_v38 = vcombine.low %v2509_v25, %v2520_v20 }
  0xef   : > { %v5312_v42 = vpop.permute.xlu1 %1379 }
  0xf0   : > { %2035 = vperm.xlu1 %4706, %v5056_v45   ;;  %v1059_v45 = vpack.c.bf16 %v1024_v13, %v1023_v17  ;;  %v4440_v56 = vpop.f32.mrb[4].mxu1 }
  0xf1   : > { %v991_v17 = vadd.f32 %v4440_v56, %v5273_v43  ;;  %v802_v37 = vpop.f32.mrb[5].mxu1  ;;  %v1340_v56 = vrot.slane %v5240_v8, %v5255_v52 }
  0xf2   : > { %v5351_v4 = vmul.bf16 %v4174_v63, %v1059_v45  ;;  %v989_v30 = vadd.f32 %v5273_v43, %v802_v37  ;;  %v4441_v10 = vpop.f32.mrb[6].mxu1  ;;  %v2553_v63 = vrot.slane %v5230_v35, %v5255_v52  ;;  %v1316_v35 = vrot.slane %v5217_v31, %v5255_v52 }
  0xf3   : > { %v5345_v0 = vpop.permute.xlu1 %1403  ;;  %v992_v18 = vadd.f32 %v4441_v10, %v5273_v43  ;;  %v805_v33 = vpop.f32.mrb[7].mxu1  ;;  %v5384_v37 = vcombine.low %v2487_v62, %v2498_v3  ;;  %v5391_v31 = vcombine.low %v2531_v59, %v2542_v49  ;;  %v5406_v25 = vcombine.low %v1340_v56, %v1352_v27 }
  0xf4   : > { %6483 = vst [vmem:[#allocation5_spill] sm:$0xff] %v5351_v4  ;;  %2057 = vperm.xlu1 %4706, %v5065_v46   ;;  %v6466_v15 = vshrl.u32 %v5351_v4, 16  ;;  %v1027_v46 = vmax.f32 %v991_v17, 0.0  ;;  %v1025_v22 = vmax.f32 %v989_v30, 0.0  ;;  %v990_v13 = vadd.f32 %v5273_v43, %v805_v33  ;;  %v5399_v3 = vpop.permute.xlu0 %2720 }
  0xf5   : > { %v1028_v17 = vmax.f32 %v992_v18, 0.0  ;;  %v1676_v30 = vshll.u32 %v5351_v4, 16  ;;  %v5389_v33 = vcombine.low %v1316_v35, %v1328_v26  ;;  %v5393_v14 = vcombine.low %v2553_v63, %v2564_v24  ;;  %6484 = vst [vmem:[#allocation6_spill] sm:$0xff] %v5399_v3  ;;  %v6490_v3 = vld [vmem:[#allocation4_spill] sm:$0xff] }
  0xf6   : > { %v5382_v36 = vrot.slane %v6466_v15, 7  ;;  %v1026_v10 = vmax.f32 %v990_v13, 0.0  ;;  %v5395_v18 = vcombine.low %v2575_v5, %v2586_v34  ;;  %v1376_v59 = vrot.slane %v5250_v44, %v5255_v52  ;;  %v973_v13 = vpop.f32.mrb[0].mxu0 }
  0xf7   : > { %v5373_v45 = vpop.permute.xlu1 %1415  ;;  %v1061_v8 = vpack.c.bf16 %v1028_v17, %v1027_v46  ;;  %v1364_v63 = vrot.slane %v5245_v7, %v5255_v52  ;;  %v2608_v27 = vrot.slane %v5257_v16, %v5255_v52  ;;  %v2630_v34 = vrot.slane %v5247_v41, %v5255_v52 }
  0xf8   : > { %2079 = vperm.xlu1 %4706, %v5078_v48   ;;  %v2597_v48 = vrot.slane %v5242_v40, %v5255_v52  ;;  %v1060_v12 = vpack.c.bf16 %v1026_v10, %v1025_v22  ;;  %v4444_v62 = vpop.f32.mrb[8].mxu1  ;;  %v5404_v20 = vor.u32 %v1676_v30, %v5382_v36 }
  0xf9   : > { %v995_v26 = vadd.f32 %v4444_v62, %v5273_v43  ;;  %v818_v49 = vpop.f32.mrb[9].mxu1  ;;  %v5415_v40 = vmul.bf16 %v5293_v1, %v1061_v8  ;;  %v5437_v35 = vcombine.low %v1364_v63, %v1376_v59  ;;  %v4474_v62 = vpop.f32.mrb[1].mxu0  ;;  %v1388_v63 = vrot.slane %v5312_v42, %v5255_v52 }
  0xfa   : > { %6485 = vst [vmem:[#allocation7_spill] sm:$0xff] %v5404_v20  ;;  %v5422_v46 = vmul.bf16 %v5289_v54, %v1060_v12  ;;  %v993_v44 = vadd.f32 %v5273_v43, %v818_v49  ;;  %v4445_v5 = vpop.f32.mrb[10].mxu1  ;;  %v2619_v54 = vrot.slane %v5283_v60, %v5255_v52  ;;  %v976_v59 = vpop.f32.mrb[2].mxu0 }
  0xfb   : > { %v1031_v1 = vmax.f32 %v995_v26, 0.0  ;;  %v996_v22 = vadd.f32 %v4445_v5, %v5273_v43  ;;  %2977 = vrot.lane.b32.xlu0 %v5415_v40, %s4771_s25  ;;  %v821_v7 = vpop.f32.mrb[11].mxu1  ;;  %v6465_v41 = vshll.u32 %v5415_v40, 16  ;;  %v5443_v26 = vcombine.low %v2597_v48, %v2608_v27  ;;  %v4475_v48 = vpop.f32.mrb[3].mxu0 }
  0xfc   : > { %v5411_v24 = vpop.permute.xlu1 %2643  ;;  %2101 = vperm.xlu1 %4706, %v5095_v51   ;;  %v1680_v16 = vshrl.u32 %v5422_v46, 16  ;;  %v1683_v12 = vshll.u32 %v5422_v46, 16  ;;  %v1029_v56 = vmax.f32 %v993_v44, 0.0  ;;  %v994_v10 = vadd.f32 %v5273_v43, %v821_v7 }
  0xfd   : > { %v1032_v17 = vmax.f32 %v996_v22, 0.0  ;;  %v5458_v27 = vcombine.low %v2619_v54, %v2630_v34  ;;  %v2364_v42 = vrot.slane %v6465_v41, 1  ;;  %v1021_v34 = vadd.f32 %v5273_v43, %v973_v13 }
  0xfe   : > { %v5447_v49 = vrot.slane %v1680_v16, 7  ;;  %v5449_v5 = vrot.slane %v1683_v12, 1  ;;  %v1030_v7 = vmax.f32 %v994_v10, 0.0  ;;  %v6486_v10 = vld [vmem:[#allocation2_spill] sm:$0xff] }
  0xff   : > { %v1063_v22 = vpack.c.bf16 %v1032_v17, %v1031_v1  ;;  %2200 = vperm.xlu0 %4704, %v5105_v53   ;;  %v1057_v41 = vmax.f32 %v1021_v34, 0.0 }
 0x100   : > { %v5440_v8 = vpop.permute.xlu1 %2654  ;;  %2123 = vperm.xlu1 %4706, %v5089_v50   ;;  %v5455_v50 = vpop.permute.xlu0 %2753  ;;  %v2363_v62 = vor.u32 %v5449_v5, %v1680_v16  ;;  %v1062_v51 = vpack.c.bf16 %v1030_v7, %v1029_v56  ;;  %v1022_v56 = vadd.f32 %v5273_v43, %v976_v59  ;;  %v1424_v59 = vrot.slane %v5373_v45, %v5255_v52 }
 0x101   : > { %v4448_v60 = vpop.f32.mrb[12].mxu1  ;;  %v5468_v53 = vmul.bf16 %v5304_v39, %v1063_v22  ;;  %v5484_v39 = vcombine.low %v1388_v63, %v1400_v28  ;;  %v1412_v28 = vrot.slane %v5345_v0, %v5255_v52 }
 0x102   : > { %v999_v1 = vadd.f32 %v4448_v60, %v5273_v43  ;;  %v834_v17 = vpop.f32.mrb[13].mxu1  ;;  %v5475_v9 = vsel %vm2358_vm2, %v2363_v62, %v2364_v42  ;;  %v5479_v60 = vor.u32 %v1683_v12, %v5447_v49  ;;  %v5487_v13 = vmul.bf16 %v5299_v55, %v1062_v51 }
 0x103   : > { %v997_v54 = vadd.f32 %v5273_v43, %v834_v17  ;;  %v4449_v16 = vpop.f32.mrb[14].mxu1  ;;  %2981 = vrot.lane.b32.xlu0 %v5468_v53, %s4771_s25  ;;  %v1688_v55 = vshrl.u32 %v5415_v40, 16  ;;  %v5512_v20 = vcombine.low %v1412_v28, %v1424_v59 }
 0x104   : > { %2145 = vperm.xlu1 %4706, %v6486_v10   ;;  %v1035_v22 = vmax.f32 %v999_v1, 0.0  ;;  %v1000_v7 = vadd.f32 %v4449_v16, %v5273_v43  ;;  %v837_v62 = vpop.f32.mrb[15].mxu1  ;;  %v6467_v51 = vshll.u32 %v5487_v13, 16  ;;  %v5500_v1 = vpop.permute.xlu0 %2797  ;;  %v6488_v10 = vld [vmem:[#allocation3_spill] sm:$0xff]  ;;  %v6468_v44 = vshrl.u32 %v5487_v13, 16 }
 0x105   : > { %v5472_v48 = vpop.permute.xlu1 %1427  ;;  %v1033_v12 = vmax.f32 %v997_v54, 0.0  ;;  %v998_v19 = vadd.f32 %v5273_v43, %v837_v62  ;;  %6487 = vst [vmem:[#allocation2_spill] sm:$0xff] %v5500_v1  ;;  %v1058_v62 = vmax.f32 %v1022_v56, 0.0  ;;  %v2366_v15 = vor.u32 %v2364_v42, %v1688_v55 }
 0x106   : > { %v1036_v63 = vmax.f32 %v1000_v7, 0.0  ;;  %v2367_v17 = vrot.slane %v6467_v51, 1  ;;  %v2359_v7 = vrot.slane %v1676_v30, 1  ;;  %v6494_v51 = vrot.slane %v5275_v58, %v5255_v52 }
 0x107   : > { %v1034_v54 = vmax.f32 %v998_v19, 0.0 }
 0x108   : > { %2167 = vperm.xlu1 %4706, %v6488_v10   ;;  %v1065_v0 = vpack.c.bf16 %v1036_v63, %v1035_v22  ;;  %v6489_v10 = vshll.u32 %v5468_v53, 16  ;;  %v4452_v1 = vpop.f32.mrb[16].mxu1  ;;  %v2368_v42 = vsel %vm2358_vm2, %v2366_v15, %v2367_v17  ;;  %v2369_v22 = vor.u32 %v2367_v17, %v6468_v44 }
 0x109   : > { %v5505_v16 = vpop.permute.xlu1 %1451  ;;  %v1064_v19 = vpack.c.bf16 %v1034_v54, %v1033_v12  ;;  %v1003_v34 = vadd.f32 %v4452_v1, %v5273_v43  ;;  %v850_v56 = vpop.f32.mrb[17].mxu1  ;;  %v2939_v1 = vmul.bf16 %v5384_v37, %v2368_v42  ;;  %v5531_v54 = vpack.c.bf16 %v1058_v62, %v1057_v41 }
 0x10a   : > { %v2370_v45 = vrot.slane %v6489_v10, 1  ;;  %v5522_v63 = vmul.bf16 %v5331_v57, %v1065_v0  ;;  %v1001_v59 = vadd.f32 %v5273_v43, %v850_v56  ;;  %v4453_v12 = vpop.f32.mrb[18].mxu1  ;;  %v2652_v15 = vrot.slane %v5411_v24, %v5255_v52  ;;  %v5537_v57 = vpop.permute.xlu0 %2434 }
 0x10b   : > { %v5525_v30 = vmul.bf16 %v5325_v29, %v1064_v19  ;;  %6491 = vst [vmem:[#allocation3_spill] sm:$0xff] %v5537_v57  ;;  %v1039_v17 = vmax.f32 %v1003_v34, 0.0  ;;  %v1004_v29 = vadd.f32 %v4453_v12, %v5273_v43  ;;  %v853_v0 = vpop.f32.mrb[19].mxu1  ;;  %v1704_v10 = vshrl.u32 %v5468_v53, 16  ;;  %3031 = vrot.lane.b32.xlu0 %v2939_v1, %s4772_s26 }
 0x10c   : > { %2189 = vperm.xlu1 %4706, %v6490_v3   ;;  %v2663_v3 = vrot.slane %v5440_v8, %v5255_v52  ;;  %v1037_v56 = vmax.f32 %v1001_v59, 0.0  ;;  %v1002_v37 = vadd.f32 %v5273_v43, %v853_v0  ;;  %v1436_v24 = vrot.slane %v5472_v48, %v5255_v52  ;;  %v4737_v8 = vld [vmem:[%s6450_s3] sm:$0xf] }
 0x10d   : > { %v5528_v28 = vpop.permute.xlu1 %1463  ;;  %v6470_v19 = vshll.u32 %v5525_v30, 16  ;;  %v1040_v41 = vmax.f32 %v1004_v29, 0.0  ;;  %v6469_v62 = vshll.u32 %v5522_v63, 16  ;;  %v6492_v34 = vshrl.u32 %v5351_v4, 16 }
 0x10e   : > { %v1038_v59 = vmax.f32 %v1002_v37, 0.0  ;;  %v2372_v12 = vor.u32 %v2370_v45, %v1704_v10  ;;  %v5557_v0 = vsel %vm2358_vm2, %v2369_v22, %v2370_v45  ;;  %v6493_v48 = vrot.slane %v5252_v11, %v5255_v52  ;;  %v5573_v44 = vpop.permute.xlu0 %1859 }
 0x10f   : > { %v5552_v42 = vor.u32 %v2359_v7, %v6492_v34  ;;  %v2373_v1 = vrot.slane %v6470_v19, 1  ;;  %v5569_v7 = vcombine.low %v2663_v3, %v6494_v51  ;;  %v1067_v37 = vpack.c.bf16 %v1040_v41, %v1039_v17  ;;  %2985 = vrot.lane.b32.xlu0 %v5522_v63, %s4771_s25 }
 0x110   : > { %1837 = vperm.xlu1 %4706, %v4737_v8   ;;  %v5562_v29 = vcombine.low %v6493_v48, %v2652_v15  ;;  %v5564_v8 = vrot.slane %v1688_v55, 7  ;;  %v6471_v45 = vshrl.u32 %v5525_v30, 16  ;;  %v1066_v22 = vpack.c.bf16 %v1038_v59, %v1037_v56  ;;  %v4456_v11 = vpop.f32.mrb[20].mxu1 }
 0x111   : > { %v2374_v55 = vsel %vm2358_vm2, %v2372_v12, %v2373_v1  ;;  %v2376_v58 = vrot.slane %v6469_v62, 1  ;;  %v1007_v51 = vadd.f32 %v4456_v11, %v5273_v43  ;;  %v866_v3 = vpop.f32.mrb[21].mxu1  ;;  %v5588_v56 = vmul.bf16 %v5389_v33, %v1067_v37 }
 0x112   : > { %v5571_v34 = vpop.permute.xlu1 %2687  ;;  %v2941_v17 = vmul.bf16 %v5391_v31, %v2374_v55  ;;  %v6495_v41 = vrot.slane %v5191_v21, %v5255_v52  ;;  %v5596_v12 = vmul.bf16 %v5343_v47, %v1066_v22  ;;  %v1005_v48 = vadd.f32 %v5273_v43, %v866_v3  ;;  %v4457_v11 = vpop.f32.mrb[22].mxu1  ;;  %v4731_v47 = vld [vmem:[%s6454_s7] sm:$0xff]  }
 0x113   : > { %v2375_v15 = vor.u32 %v2373_v1, %v6471_v45  ;;  %v5602_v31 = vrot.slane %v1704_v10, 7  ;;  %v1720_v33 = vshrl.u32 %v5522_v63, 16  ;;  %v1043_v37 = vmax.f32 %v1007_v51, 0.0  ;;  %4512 = vmatprep.subr.bf16.mxu0 %v4731_v47 }
 0x114   : > { %2975 = vrot.lane.b32.xlu1 %v5422_v46, %s4771_s25  ;;  %v5593_v59 = vcombine.low %v1436_v24, %v6495_v41  ;;  %v6496_v46 = vmov 2   ;;  %v1008_v21 = vadd.f32 %v4457_v11, %v5273_v43  ;;  %v869_v24 = vpop.f32.mrb[23].mxu1  ;;  %v6472_v22 = vshll.u32 %v5596_v12, 16  ;;  %3035 = vrot.lane.b32.xlu0 %v2941_v17, %s4772_s26 }
 0x115   : > { %4707 = vset.pattern.permute.xlu1 %v6496_v46  ;;  %v1041_v3 = vmax.f32 %v1005_v48, 0.0  ;;  %v1006_v10 = vadd.f32 %v5273_v43, %v869_v24  ;;  %v6473_v1 = vshll.u32 %v5588_v56, 16  ;;  %v1472_v51 = vrot.slane %v5528_v28, %v5255_v52  ;;  %4513 = vmatpush3.bf16.msra.mxu0 %v4731_v47 }
 0x116   : > { %v5606_v55 = vpop.permute.xlu1 %2698  ;;  %v2378_v41 = vor.u32 %v2376_v58, %v1720_v33  ;;  %v1044_v11 = vmax.f32 %v1008_v21, 0.0  ;;  %v2938_v62 = vmul.bf16 %v5341_v61, %v5475_v9  ;;  %v6474_v48 = vshrl.u32 %v5596_v12, 16 }
 0x117   : > { %v2379_v17 = vrot.slane %v6472_v22, 1  ;;  %v1042_v24 = vmax.f32 %v1006_v10, 0.0  ;;  %v5625_v19 = vsel %vm2358_vm2, %v2375_v15, %v2376_v58  ;;  %v6497_v28 = vshrl.u32 %v5487_v13, 16 }
 0x118   : > { %2979 = vrot.lane.b32.xlu1 %v5487_v13, %s4771_s25  ;;  %v1460_v45 = vrot.slane %v5505_v16, %v5255_v52  ;;  %v2696_v9 = vrot.slane %v5571_v34, %v5255_v52  ;;  %v1069_v61 = vpack.c.bf16 %v1044_v11, %v1043_v37  ;;  %2989 = vrot.lane.b32.xlu0 %v5588_v56, %s4771_s25  ;;  %v2382_v15 = vrot.slane %v6473_v1, 1  ;;  %v4460_v58 = vpop.f32.mrb[24].mxu1 }
 0x119   : > { %v5629_v21 = vrot.slane %v6497_v28, 7  ;;  %v2381_v22 = vor.u32 %v2379_v17, %v6474_v48  ;;  %v1068_v10 = vpack.c.bf16 %v1042_v24, %v1041_v3  ;;  %v2380_v28 = vsel %vm2358_vm2, %v2378_v41, %v2379_v17  ;;  %v882_v11 = vpop.f32.mrb[25].mxu1 }
 0x11a   : > { %v5643_v16 = vmul.bf16 %v5437_v35, %v1069_v61  ;;  %v1736_v34 = vshrl.u32 %v5588_v56, 16  ;;  %v1011_v37 = vadd.f32 %v4460_v58, %v5273_v43  ;;  %v2943_v3 = vmul.bf16 %v5395_v18, %v2380_v28  ;;  %v4461_v41 = vpop.f32.mrb[26].mxu1 }
 0x11b   : > { %v1476_v47 = vpop.permute.xlu1 %1475  ;;  %v5649_v24 = vcombine.low %v1460_v45, %v1472_v51  ;;  %v5652_v1 = vmul.bf16 %v5406_v25, %v1068_v10  ;;  %v1009_v48 = vadd.f32 %v5273_v43, %v882_v11  ;;  %v5656_v35 = vsel %vm2358_vm2, %v2381_v22, %v2382_v15  ;;  %v885_v18 = vpop.f32.mrb[27].mxu1 }
 0x11c   : > { %3029 = vrot.lane.b32.xlu1 %v2938_v62, %s4772_s26  ;;  %v6498_v17 = vshrl.u32 %v5525_v30, 16  ;;  %v5662_v58 = vrot.slane %v1720_v33, 7  ;;  %v6477_v62 = vshll.u32 %v5643_v16, 16  ;;  %v2940_v45 = vmul.bf16 %v5386_v38, %v5557_v0  ;;  %3039 = vrot.lane.b32.xlu0 %v2943_v3, %s4772_s26 }
 0x11d   : > { %v6499_v25 = vrot.slane %v5314_v6, %v5255_v52  ;;  %v6476_v22 = vshll.u32 %v5652_v1, 16  ;;  %v1047_v10 = vmax.f32 %v1011_v37, 0.0  ;;  %v1012_v28 = vadd.f32 %v4461_v41, %v5273_v43 }
 0x11e   : > { %v5660_v61 = vrot.slane %v6498_v17, 7  ;;  %v2707_v11 = vrot.slane %v5606_v55, %v5255_v52  ;;  %v5679_v17 = vrot.slane %v1736_v34, 7  ;;  %v1045_v38 = vmax.f32 %v1009_v48, 0.0 }
 0x11f   : > { %v5670_v51 = vcombine.low %v6499_v25, %v2696_v9  ;;  %v5675_v33 = vpop.permute.xlu1 %1499  ;;  %v1010_v0 = vadd.f32 %v5273_v43, %v885_v18  ;;  %v1744_v6 = vshrl.u32 %v5652_v1, 16  ;;  %v2385_v9 = vrot.slane %v6476_v22, 1 }
 0x120   : > { %2983 = vrot.lane.b32.xlu1 %v5525_v30, %s4771_s25  ;;  %v2384_v37 = vor.u32 %v2382_v15, %v1736_v34  ;;  %v1048_v3 = vmax.f32 %v1012_v28, 0.0  ;;  %v2388_v41 = vrot.slane %v6477_v62, 1  ;;  %v1484_v55 = vrot.slane %v1476_v47, %v5255_v52  ;;  %2993 = vrot.lane.b32.xlu0 %v5643_v16, %s4771_s25  ;;  %v4464_v4 = vpop.f32.mrb[28].mxu1 }
 0x121   : > { %v1046_v25 = vmax.f32 %v1010_v0, 0.0  ;;  %v5693_v48 = vsel %vm1671_vm3, %v5382_v36, %v5479_v60  ;;  %v2387_v18 = vor.u32 %v2385_v9, %v1744_v6  ;;  %v6500_v34 = vshll.u32 %v5415_v40, 16  ;;  %v898_v36 = vpop.f32.mrb[29].mxu1 }
 0x122   : > { %v1071_v57 = vpack.c.bf16 %v1048_v3, %v1047_v10  ;;  %v2386_v15 = vsel %vm2358_vm2, %v2384_v37, %v2385_v9  ;;  %v1752_v47 = vshrl.u32 %v5643_v16, 16  ;;  %v1015_v62 = vadd.f32 %v4464_v4, %v5273_v43  ;;  %v4465_v37 = vpop.f32.mrb[30].mxu1 }
 0x123   : > { %v1512_v22 = vpop.permute.xlu1 %1511  ;;  %v1693_v28 = vor.u32 %v6500_v34, %v5564_v8  ;;  %v1070_v0 = vpack.c.bf16 %v1046_v25, %v1045_v38  ;;  %v2945_v60 = vmul.bf16 %v5458_v27, %v2386_v15  ;;  %v6501_v10 = vshrl.u32 %v5596_v12, 16  ;;  %v901_v15 = vpop.f32.mrb[31].mxu1 }
 0x124   : > { %3033 = vrot.lane.b32.xlu1 %v2940_v45, %s4772_s26  ;;  %v5710_v9 = vmul.bf16 %v5512_v20, %v1071_v57  ;;  %v1013_v40 = vadd.f32 %v5273_v43, %v898_v36  ;;  %v5714_v34 = vsel %vm2358_vm2, %v2387_v18, %v2388_v41  ;;  %v6502_v4 = vrot.slane %v5362_v32, %v5255_v52 }
 0x125   : > { %v5707_v3 = vrot.slane %v6501_v10, 7  ;;  %v5722_v27 = vmul.bf16 %v5484_v39, %v1070_v0  ;;  %v1051_v45 = vmax.f32 %v1015_v62, 0.0  ;;  %v1016_v25 = vadd.f32 %v4465_v37, %v5273_v43  ;;  %3043 = vrot.lane.b32.xlu0 %v2945_v60, %s4772_s26 }
 0x126   : > { %v5719_v38 = vcombine.low %v2707_v11, %v6502_v4  ;;  %v6503_v20 = vrot.slane %v5198_v23, %v5255_v52  ;;  %v1049_v36 = vmax.f32 %v1013_v40, 0.0  ;;  %v1014_v18 = vadd.f32 %v5273_v43, %v901_v15 }
 0x127   : > { %v2942_v32 = vmul.bf16 %v5393_v14, %v5625_v19  ;;  %v5734_v11 = vrot.slane %v1752_v47, 7  ;;  %v6478_v39 = vshll.u32 %v5710_v9, 16  ;;  %v6479_v62 = vshll.u32 %v5722_v27, 16 }
 0x128   : > { %v5728_v57 = vcombine.low %v1484_v55, %v6503_v20  ;;  %v1052_v0 = vmax.f32 %v1016_v25, 0.0  ;;  %v5738_v10 = vpop.permute.xlu1 %2731  ;;  %2987 = vrot.lane.b32.xlu1 %v5596_v12, %s4771_s25  ;;  %v5742_v23 = vrot.slane %v1744_v6, 7  ;;  %v1508_v55 = vrot.slane %v5675_v33, %v5255_v52 }
 0x129   : > { %v1050_v60 = vmax.f32 %v1014_v18, 0.0  ;;  %v2944_v14 = vmul.bf16 %v5443_v26, %v5656_v35  ;;  %v2390_v19 = vor.u32 %v2388_v41, %v1752_v47  ;;  %v2391_v40 = vrot.slane %v6479_v62, 1  ;;  %2997 = vrot.lane.b32.xlu0 %v5710_v9, %s4771_s25  ;;  %v4468_v33 = vpop.f32.mrb[32].mxu1 }
 0x12a   : > { %v1520_v37 = vrot.slane %v1512_v22, %v5255_v52  ;;  %v1073_v4 = vpack.c.bf16 %v1052_v0, %v1051_v45  ;;  %v1768_v25 = vshrl.u32 %v5710_v9, 16  ;;  %v1760_v15 = vshrl.u32 %v5722_v27, 16  ;;  %v914_v41 = vpop.f32.mrb[33].mxu1 }
 0x12b   : > { %v1072_v6 = vpack.c.bf16 %v1050_v60, %v1049_v36  ;;  %v5757_v20 = vsel %vm1671_vm3, %v5447_v49, %v1693_v28  ;;  %v2394_v26 = vrot.slane %v6478_v39, 1  ;;  %v1019_v22 = vadd.f32 %v4468_v33, %v5273_v43  ;;  %v4469_v28 = vpop.f32.mrb[34].mxu1 }
 0x12c   : > { %v5762_v35 = vmul.bf16 %v5649_v24, %v1073_v4  ;;  %v2743_v47 = vpop.permute.xlu1 %2742  ;;  %3037 = vrot.lane.b32.xlu1 %v2942_v32, %s4772_s26  ;;  %v2392_v45 = vsel %vm2358_vm2, %v2390_v19, %v2391_v40  ;;  %v2393_v36 = vor.u32 %v2391_v40, %v1760_v15  ;;  %v1017_v49 = vadd.f32 %v5273_v43, %v914_v41  ;;  %v917_v33 = vpop.f32.mrb[35].mxu1 }
 0x12d   : > { %v5768_v18 = vmul.bf16 %v5593_v59, %v1072_v6  ;;  %v2947_v0 = vmul.bf16 %v5569_v7, %v2392_v45  ;;  %v4190_v60 = vcombine.low %v1508_v55, %v1520_v37  ;;  %v1055_v24 = vmax.f32 %v1019_v22, 0.0  ;;  %v5785_v41 = vpop.permute.xlu0 %1903 }
 0x12e   : > { %v1020_v4 = vadd.f32 %v4469_v28, %v5273_v43  ;;  %v5775_v32 = vrot.slane %v1768_v25, 7  ;;  %v1787_v19 = vshll.u32 %v5762_v35, 16  ;;  %v2751_v40 = vrot.slane %v2743_v47, %v5255_v52  ;;  %6504 = vst [vmem:[#allocation4_spill] sm:$0xff] %v5785_v41 }
 0x12f   : > { %v1779_v59 = vshll.u32 %v5768_v18, 16  ;;  %3047 = vrot.lane.b32.xlu0 %v2947_v0, %s4772_s26  ;;  %v1784_v7 = vshrl.u32 %v5762_v35, 16  ;;  %v1053_v55 = vmax.f32 %v1017_v49, 0.0  ;;  %v1018_v6 = vadd.f32 %v5273_v43, %v917_v33 }
 0x130   : > { %v1056_v37 = vmax.f32 %v1020_v4, 0.0  ;;  %2991 = vrot.lane.b32.xlu1 %v5652_v1, %s4771_s25  ;;  %v2396_v22 = vor.u32 %v2394_v26, %v1768_v25  ;;  %v1776_v45 = vshrl.u32 %v5768_v18, 16  ;;  %v5791_v0 = vsel %vm2358_vm2, %v2393_v36, %v2394_v26 }
 0x131   : > { %v2397_v28 = vrot.slane %v1779_v59, 1  ;;  %v1524_v47 = vpop.permute.xlu1 %1523  ;;  %v5793_v62 = vrot.slane %v1760_v15, 7  ;;  %v1054_v4 = vmax.f32 %v1018_v6, 0.0  ;;  %v2400_v25 = vrot.slane %v1787_v19, 1 }
 0x132   : > { %v1075_v49 = vpack.c.bf16 %v1056_v37, %v1055_v24  ;;  %v1532_v43 = vrot.slane %v1524_v47, %v5255_v52  ;;  %v6505_v39 = vrot.slane %v5455_v50, %v5255_v52  ;;  %v5804_v36 = vrot.slane %v1784_v7, 7 }
 0x133   : > { %v2399_v33 = vor.u32 %v2397_v28, %v1776_v45  ;;  %3001 = vrot.lane.b32.xlu0 %v5762_v35, %s4771_s25  ;;  %v2398_v26 = vsel %vm2358_vm2, %v2396_v22, %v2397_v28  ;;  %v1074_v24 = vpack.c.bf16 %v1054_v4, %v1053_v55  ;;  %v6506_v37 = vrot.slane %v5203_v2, %v5255_v52 }
 0x134   : > { %v4224_v41 = vcombine.low %v2751_v40, %v6505_v39  ;;  %v5806_v15 = vmul.bf16 %v4190_v60, %v1075_v49  ;;  %3041 = vrot.lane.b32.xlu1 %v2944_v14, %s4772_s26  ;;  %v5818_v50 = vsel %vm2358_vm2, %v5552_v42, %v5449_v5  ;;  %v6507_v39 = vshll.u32 %v5487_v13, 16  ;;  %v5833_v5 = vpop.permute.xlu0 %1936 }
 0x135   : > { %v4191_v6 = vcombine.low %v1532_v43, %v6506_v37  ;;  %v5813_v47 = vsel %vm2358_vm2, %v2399_v33, %v2400_v25  ;;  %v6508_v40 = vshll.u32 %v5468_v53, 16  ;;  %v5826_v2 = vrot.slane %v1776_v45, 7  ;;  %v4738_v53 = vld [vmem:[%s6450_s3 + $0x4] sm:$0xf] }
 0x136   : > { %v1701_v60 = vor.u32 %v6507_v39, %v5629_v21  ;;  %v1800_v14 = vshrl.u32 %v5806_v15, 16  ;;  %v1803_v22 = vshll.u32 %v5806_v15, 16  ;;  %v5831_v28 = vmul.bf16 %v5728_v57, %v1074_v24  ;;  %v2765_v49 = vpop.permute.xlu1 %2764 }
 0x137   : > { %v1709_v55 = vor.u32 %v6508_v40, %v5602_v31  ;;  %v2402_v42 = vor.u32 %v2400_v25, %v1784_v7  ;;  %v5836_v13 = vmul.bf16 %v4191_v6, %v5531_v54  ;;  %1848 = vperm.xlu0 %4704, %v4738_v53   ;;  %v2949_v54 = vmul.bf16 %v5719_v38, %v2398_v26  ;;  %v4732_v6 = vld [vmem:[%s6454_s7 + $0x8] ss:$0 sps:$4 sm:$0xff]  }
 0x138   : > { %v5845_v4 = vsel %vm1671_vm3, %v5564_v8, %v1701_v60  ;;  %v1792_v57 = vshrl.u32 %v5831_v28, 16  ;;  %v1795_v43 = vshll.u32 %v5831_v28, 16  ;;  %2995 = vrot.lane.b32.xlu1 %v5722_v27, %s4771_s25  ;;  %v2406_v7 = vrot.slane %v1803_v22, 1  ;;  %4649 = vmatprep.subr.msk.bf16.mxu0 %vm3202_vm4, %v4732_v6 }
 0x139   : > { %v1808_v33 = vshrl.u32 %v5836_v13, 16  ;;  %v1811_v25 = vshll.u32 %v5836_v13, 16  ;;  %v5858_v8 = vsel %vm1671_vm3, %v5629_v21, %v1709_v55  ;;  %v6509_v24 = vshll.u32 %v5525_v30, 16 }
 0x13a   : > { %v5866_v38 = vrot.slane %v1800_v14, 7  ;;  %v1794_v26 = vrot.slane %v1792_v57, 7  ;;  %v2403_v39 = vrot.slane %v1795_v43, 1  ;;  %v2773_v60 = vrot.slane %v2765_v49, %v5255_v52  ;;  %v2776_v40 = vpop.permute.xlu1 %2775 }
 0x13b   : > { %v1717_v37 = vor.u32 %v6509_v24, %v5660_v61  ;;  %3051 = vrot.lane.b32.xlu0 %v2949_v54, %s4772_s26  ;;  %v2784_v21 = vrot.slane %v2776_v40, %v5255_v52  ;;  %v2408_v55 = vor.u32 %v2406_v7, %v1800_v14  ;;  %v2409_v30 = vrot.slane %v1811_v25, 1  ;;  %v5886_v40 = vpop.permute.xlu0 %1958 }
 0x13c   : > { %v2405_v24 = vor.u32 %v2403_v39, %v1792_v57  ;;  %v6510_v45 = vmul.bf16 %v5562_v29, %v5714_v34  ;;  %v2404_v49 = vsel %vm2358_vm2, %v2402_v42, %v2403_v39  ;;  %4708 = vset.pattern.permute.xlu0 %v6496_v46  ;;  %v6511_v14 = vshll.u32 %v5522_v63, 16 }
 0x13d   : > { %v5875_v53 = vsel %vm1671_vm3, %v5602_v31, %v1717_v37  ;;  %v1810_v31 = vrot.slane %v1808_v33, 7  ;;  %v2951_v57 = vmul.bf16 %v4224_v41, %v2404_v49  ;;  %v5891_v37 = vsel %vm2358_vm2, %v2408_v55, %v2409_v30 }
 0x13e   : > { %3045 = vrot.lane.b32.xlu1 %v6510_v45, %s4772_s26  ;;  %v1725_v54 = vor.u32 %v6511_v14, %v5662_v58  ;;  %v6512_v29 = vshll.u32 %v5596_v12, 16  ;;  %v2407_v42 = vsel %vm2358_vm2, %v2405_v24, %v2406_v7  ;;  %v6513_v45 = vshll.u32 %v5588_v56, 16 }
 0x13f   : > { %v6514_v41 = vshll.u32 %v5652_v1, 16  ;;  %v4225_v49 = vcombine.low %v2773_v60, %v2784_v21  ;;  %3055 = vrot.lane.b32.xlu0 %v2951_v57, %s4772_s26  ;;  %v1871_v12 = vpop.permute.xlu1 %1870  ;;  %v6516_v56 = vshll.u32 %v5722_v27, 16 }
 0x140   : > { %v1733_v34 = vor.u32 %v6512_v29, %v5707_v3  ;;  %v5900_v63 = vsel %vm1671_vm3, %v5660_v61, %v1725_v54  ;;  %v1741_v39 = vor.u32 %v6513_v45, %v5679_v17  ;;  %v6515_v61 = vshll.u32 %v5643_v16, 16 }
 0x141   : > { %v1749_v55 = vor.u32 %v6514_v41, %v5742_v23  ;;  %v1765_v24 = vor.u32 %v6516_v56, %v5793_v62  ;;  %v1879_v54 = vrot.slane %v1871_v12, %v5255_v52  ;;  %v6517_v16 = vshll.u32 %v5710_v9, 16  ;;  %v6020_v41 = vld [vmem:[%s6455_s8] sm:$0xff]  }
 0x142   : > { %v5911_v14 = vsel %vm1671_vm3, %v5662_v58, %v1733_v34  ;;  %v1757_v7 = vor.u32 %v6515_v61, %v5734_v11  ;;  %2999 = vrot.lane.b32.xlu1 %v5768_v18, %s4771_s25  ;;  %v5924_v1 = vsel %vm1671_vm3, %v5707_v3, %v1741_v39  ;;  %v1781_v3 = vor.u32 %v1779_v59, %v5826_v2  ;;  %v5961_v59 = vpop.permute.xlu0 %1980  ;;  %v6520_v39 = vld [vmem:[#allocation6_spill] sm:$0xff] }
 0x143   : > { %v5928_v58 = vsel %vm1671_vm3, %v5679_v17, %v1749_v55  ;;  %v1773_v60 = vor.u32 %v6517_v16, %v5775_v32  ;;  %v5939_v21 = vsel %vm1671_vm3, %v5734_v11, %v1765_v24  ;;  %v1789_v17 = vor.u32 %v1787_v19, %v5804_v36 }
 0x144   : > { %v5935_v27 = vsel %vm1671_vm3, %v5742_v23, %v1757_v7  ;;  %v6518_v9 = vrot.slane %v5573_v44, %v5255_v52  ;;  %v1797_v29 = vor.u32 %v1795_v43, %v1794_v26  ;;  %v1805_v11 = vor.u32 %v1803_v22, %v5866_v38  ;;  %v5966_v44 = vld [vmem:[%s6450_s3 + $0x8c] sm:$0xf]  ;;  %v2787_v22 = vpop.permute.xlu1 %2786  ;;  %v6523_v7 = vld [vmem:[#allocation2_spill] sm:$0xff] }
 0x145   : > { %v5954_v23 = vsel %vm1671_vm3, %v5793_v62, %v1773_v60  ;;  %v2740_v18 = vrot.slane %v5738_v10, %v5255_v52  ;;  %2819 = vperm.xlu0 %4708, %v5966_v44   ;;  %v5971_v62 = vsel %vm1671_vm3, %v5775_v32, %v1781_v3  ;;  %v5975_v35 = vsel %vm1671_vm3, %v5826_v2, %v1789_v17  ;;  %v6524_v17 = vld [vmem:[#allocation3_spill] sm:$0xff] }
 0x146   : > { %v5950_v57 = vcombine.low %v6518_v9, %v1879_v54  ;;  %v3379_v19 = vsel %vm3202_vm4, %v4732_v6, 0  ;;  %v6519_v43 = vmul.bf16 %v5670_v51, %v5791_v0  ;;  %v5986_v34 = vsel %vm1671_vm3, %v5804_v36, %v1797_v29 }
 0x147   : > { %v5989_v32 = vsel %vm1671_vm3, %v1794_v26, %v1805_v11  ;;  %4515 = vmatpush3.bf16.msra.mxu0 %v3379_v19  ;;  %v2952_v2 = vmul.bf16 %v4225_v49, %v2407_v42  ;;  %v5993_v6 = vor.u32 %v2409_v30, %v1808_v33  ;;  %v1813_v45 = vor.u32 %v1811_v25, %v1810_v31  ;;  %v4740_v26 = vld [vmem:[%s6450_s3 + $0x88] sm:$0xf]  ;;  %v6008_v30 = vpop.permute.xlu0 %2002  ;;  %v6522_v42 = vld [vmem:[#allocation5_spill] sm:$0xff]  ;;  %v6525_v19 = vld [vmem:[#allocation4_spill] sm:$0xff] }
 0x148   : > { %v2341_v10 = vmul.bf16 %v5950_v57, %v5693_v48  ;;  %3049 = vrot.lane.b32.xlu1 %v6519_v43, %s4772_s26  ;;  %v2729_v51 = vrot.slane %v6520_v39, %v5255_v52  ;;  %v6521_v33 = vmov 1   ;;  %v2795_v49 = vrot.slane %v2787_v22, %v5255_v52  ;;  %4548 = vmatprep.subr.bf16.mxu0 %v6020_v41 }
 0x149   : > { %3057 = vrot.lane.b32.xlu0 %v2952_v2, %s4772_s26  ;;  %v6002_v0 = vsel %vm1671_vm3, %v5866_v38, %v1813_v45  ;;  %v1882_v25 = vpop.permute.xlu1 %1881  ;;  %v4733_v38 = vld [vmem:[%s6453_s6] sm:$0xff]   ;;  %v2806_v56 = vrot.slane %v6523_v7, %v5255_v52  ;;  %v2443_v9 = vrot.slane %v6524_v17, %v5255_v52  ;;  %v1912_v22 = vrot.slane %v6525_v19, %v5255_v52 }
 0x14a   : > { %v4223_v36 = vcombine.low %v2729_v51, %v2740_v18  ;;  %4709 = vset.pattern.permute.xlu0 %v6521_v33  ;;  %4476 = vmatprep.subr.bf16.mxu1 %v4733_v38  ;;  %v1945_v51 = vrot.slane %v5833_v5, %v5255_v52 }
 0x14b   : > { %v2025_v61 = vpop.permute.xlu0 %2024  ;;  %4477 = vmatpush3.bf16.msra.mxu1 %v4733_v38  ;;  %v4226_v54 = vcombine.low %v2795_v49, %v2806_v56  ;;  %v1989_v49 = vrot.slane %v5961_v59, %v5255_v52 }
 0x14c   : > { %2808 = vperm.xlu1 %4707, %v4740_v26   ;;  %v2950_v31 = vmul.bf16 %v4223_v36, %v5813_v47  ;;  %v1890_v47 = vrot.slane %v1882_v25, %v5255_v52  ;;  %v1967_v25 = vrot.slane %v5886_v40, %v5255_v52  ;;  %v2033_v17 = vrot.slane %v2025_v61, %v5255_v52 }
 0x14d   : > { %2973 = vrot.lane.b32.xlu0 %v6522_v42, %s4771_s25  ;;  %v1893_v55 = vpop.permute.xlu1 %1892  ;;  %v2953_v11 = vmul.bf16 %v4226_v54, %v5891_v37 }
 0x14e   : > { %v1901_v12 = vrot.slane %v1893_v55, %v5255_v52 }
 0x14f   : > { %v2047_v29 = vpop.permute.xlu0 %2046 }
 0x150   : > { %3053 = vrot.lane.b32.xlu1 %v2950_v31, %s4772_s26  ;;  %v6029_v24 = vcombine.low %v1890_v47, %v1901_v12 }
 0x151   : > { %4710 = vset.pattern.permute.xlu1 %v6521_v33  ;;  %2211 = vperm.xlu0 %4709, %v4740_v26  }
 0x152   : > { %v2342_v16 = vmul.bf16 %v6029_v24, %v5757_v20  ;;  %v2446_v60 = vpop.permute.xlu1 %2445 }
 0x153   : > { %v2454_v3 = vrot.slane %v2446_v60, %v5255_v52 }
 0x154   : > { %3003 = vrot.lane.b32.xlu1 %v5831_v28, %s4771_s25 }
 0x155   : > { %4711 = vset.pattern.permute.xlu0 %v6496_v46  ;;  %v4210_v18 = vcombine.low %v2443_v9, %v2454_v3  ;;  %v4735_v46 = vld [vmem:[%s6453_s6 + $0x8] ss:$0 sps:$4 sm:$0xff]  }
 0x156   : > { %4648 = vmatprep.subr.msk.bf16.mxu1 %vm3202_vm4, %v4735_v46  ;;  %v3204_v37 = vsel %vm3202_vm4, %v4735_v46, 0 }
 0x157   : > { %v1915_v28 = vpop.permute.xlu1 %1914  ;;  %v2937_v2 = vmul.bf16 %v4210_v18, %v5818_v50  ;;  %4479 = vmatpush3.bf16.msra.mxu1 %v3204_v37 }
 0x158   : > { %3005 = vrot.lane.b32.xlu1 %v5806_v15, %s4771_s25  ;;  %v1923_v43 = vrot.slane %v1915_v28, %v5255_v52  ;;  %v2069_v15 = vpop.permute.xlu0 %2068 }
 0x15a   : > { %v6050_v45 = vcombine.low %v1912_v22, %v1923_v43 }
 0x15b   : > { %v1926_v39 = vpop.permute.xlu1 %1925 }
 0x15c   : > { %3059 = vrot.lane.b32.xlu1 %v2953_v11, %s4772_s26  ;;  %v2343_v36 = vmul.bf16 %v6050_v45, %v5845_v4  ;;  %v1934_v26 = vrot.slane %v1926_v39, %v5255_v52  ;;  %v2091_v5 = vpop.permute.xlu0 %2090 }
 0x15e   : > { %v6060_v50 = vcombine.low %v1934_v26, %v1945_v51 }
 0x15f   : > { %v1948_v33 = vpop.permute.xlu1 %1947 }
 0x160   : > { %3027 = vrot.lane.b32.xlu1 %v2937_v2, %s4772_s26  ;;  %v2344_v31 = vmul.bf16 %v6060_v50, %v5858_v8  ;;  %v1956_v42 = vrot.slane %v1948_v33, %v5255_v52  ;;  %v2113_v7 = vpop.permute.xlu0 %2112  ;;  %v2077_v2 = vrot.slane %v2069_v15, %v5255_v52 }
 0x161   : > { %v2121_v15 = vrot.slane %v2113_v7, %v5255_v52 }
 0x162   : > { %v6068_v38 = vcombine.low %v1956_v42, %v1967_v25 }
 0x163   : > { %v1970_v55 = vpop.permute.xlu1 %1969 }
 0x164   : > { %2222 = vperm.xlu1 %4710, %v5966_v44   ;;  %v2345_v47 = vmul.bf16 %v6068_v38, %v5875_v53  ;;  %v1978_v12 = vrot.slane %v1970_v55, %v5255_v52  ;;  %v2011_v44 = vrot.slane %v6008_v30, %v5255_v52  ;;  %v2135_v11 = vpop.permute.xlu0 %2134  ;;  %v2055_v30 = vrot.slane %v2047_v29, %v5255_v52 }
 0x165   : > { %v2099_v29 = vrot.slane %v2091_v5, %v5255_v52 }
 0x166   : > { %v6077_v40 = vcombine.low %v1978_v12, %v1989_v49 }
 0x167   : > { %v1992_v56 = vpop.permute.xlu1 %1991 }
 0x168   : > { %3007 = vrot.lane.b32.xlu1 %v5836_v13, %s4771_s25  ;;  %v2346_v54 = vmul.bf16 %v6077_v40, %v5900_v63  ;;  %v2000_v59 = vrot.slane %v1992_v56, %v5255_v52  ;;  %v2157_v46 = vpop.permute.xlu0 %2156 }
 0x16a   : > { %v6084_v60 = vcombine.low %v2000_v59, %v2011_v44 }
 0x16b   : > { %v2014_v3 = vpop.permute.xlu1 %2013 }
 0x16c   : > { %v2347_v13 = vmul.bf16 %v6084_v60, %v5911_v14  ;;  %v2022_v9 = vrot.slane %v2014_v3, %v5255_v52  ;;  %v2179_v42 = vpop.permute.xlu0 %2178  ;;  %v2143_v3 = vrot.slane %v2135_v11, %v5255_v52 }
 0x16e   : > { %v6090_v18 = vcombine.low %v2022_v9, %v2033_v17 }
 0x16f   : > { %v2036_v28 = vpop.permute.xlu1 %2035 }
 0x170   : > { %v2348_v19 = vmul.bf16 %v6090_v18, %v5924_v1  ;;  %v2044_v22 = vrot.slane %v2036_v28, %v5255_v52  ;;  %v2978_v44 = vpop.permute.xlu0 %2977  ;;  %v6526_v18 = vld [vmem:[#allocation7_spill] sm:$0xff] }
 0x172   : > { %v6096_v43 = vcombine.low %v2044_v22, %v2055_v30  ;;  %v2165_v22 = vrot.slane %v2157_v46, %v5255_v52 }
 0x173   : > { %v2058_v61 = vpop.permute.xlu1 %2057 }
 0x174   : > { %v2349_v39 = vmul.bf16 %v6096_v43, %v5928_v58  ;;  %v2066_v37 = vrot.slane %v2058_v61, %v5255_v52 }
 0x176   : > { %v6102_v51 = vcombine.low %v2066_v37, %v2077_v2 }
 0x177   : > { %v2080_v26 = vpop.permute.xlu1 %2079 }
 0x178   : > { %v2350_v33 = vmul.bf16 %v6102_v51, %v5935_v27  ;;  %v2088_v25 = vrot.slane %v2080_v26, %v5255_v52 }
 0x17a   : > { %v6108_v55 = vcombine.low %v2088_v25, %v2099_v29  ;;  %v2187_v29 = vrot.slane %v2179_v42, %v5255_v52 }
 0x17b   : > { %v2102_v49 = vpop.permute.xlu1 %2101 }
 0x17c   : > { %v2351_v12 = vmul.bf16 %v6108_v55, %v5939_v21  ;;  %v2110_v56 = vrot.slane %v2102_v49, %v5255_v52 }
 0x17e   : > { %v6114_v59 = vcombine.low %v2110_v56, %v2121_v15  ;;  %v2201_v28 = vpop.permute.xlu0 %2200 }
 0x17f   : > { %v2124_v5 = vpop.permute.xlu1 %2123 }
 0x180   : > { %v2132_v9 = vrot.slane %v2124_v5, %v5255_v52  ;;  %v2209_v5 = vrot.slane %v2201_v28, %v5255_v52  ;;  %v6527_v27 = vmul.bf16 %v6114_v59, %v5954_v23 }
 0x182   : > { %v6120_v30 = vcombine.low %v2132_v9, %v2143_v3  ;;  %v2982_v37 = vpop.permute.xlu0 %2981 }
 0x183   : > { %v2146_v7 = vpop.permute.xlu1 %2145 }
 0x184   : > { %v2154_v2 = vrot.slane %v2146_v7, %v5255_v52 }
 0x186   : > { %v6126_v26 = vcombine.low %v2154_v2, %v2165_v22  ;;  %v3032_v15 = vpop.permute.xlu0 %3031  ;;  %v4736_v2 = vld [vmem:[%s6455_s8 + $0x8] ss:$0 sps:$4 sm:$0xff]  }
 0x187   : > { %v2168_v11 = vpop.permute.xlu1 %2167  ;;  %v3557_v20 = vsel %vm3202_vm4, %v4736_v2, 0 }
 0x188   : > { %v2176_v49 = vrot.slane %v2168_v11, %v5255_v52 }
 0x18a   : > { %v6132_v56 = vcombine.low %v2176_v49, %v2187_v29  ;;  %v2986_v7 = vpop.permute.xlu0 %2985 }
 0x18b   : > { %v2190_v46 = vpop.permute.xlu1 %2189 }
 0x18c   : > { %v2198_v9 = vrot.slane %v2190_v46, %v5255_v52 }
 0x18e   : > { %v6138_v22 = vcombine.low %v2198_v9, %v2209_v5  ;;  %v3036_v25 = vpop.permute.xlu0 %3035  ;;  %v3072_v5 = vsel %vm3063_vm5, %v2342_v16, %v2978_v44  ;;  %v3078_v16 = vsel %vm3063_vm5, %v2344_v31, %v2982_v37 }
 0x18f   : > { %v1838_v42 = vpop.permute.xlu1 %1837  ;;  %v6157_v3 = vsel %vm563_vm1, %v3072_v5, %v3032_v15 }
 0x190   : > { %v1846_v14 = vrot.slane %v1838_v42, %v5255_v52 }
 0x192   : > { %v2990_v61 = vpop.permute.xlu0 %2989 }
 0x193   : > { %v2976_v11 = vpop.permute.xlu1 %2975  ;;  %v3090_v40 = vsel %vm3063_vm5, %v2348_v19, %v2990_v61  ;;  %v1835_v19 = vsel %vm1834_vm8, 0, %v6526_v18 }
 0x194   : > { %v3069_v28 = vsel %vm3063_vm5, %v2341_v10, %v2976_v11 }
 0x196   : > { %v3040_v49 = vpop.permute.xlu0 %3039 }
 0x197   : > { %v2980_v29 = vpop.permute.xlu1 %2979 }
 0x198   : > { %v3075_v10 = vsel %vm3063_vm5, %v2343_v36, %v2980_v29  ;;  %v3084_v36 = vsel %vm3063_vm5, %v2346_v54, %v2986_v7 }
 0x199   : > { %v6196_v37 = vsel %vm563_vm1, %v3084_v36, %v3040_v49 }
 0x19a   : > { %v2994_v17 = vpop.permute.xlu0 %2993 }
 0x19b   : > { %v3030_v46 = vpop.permute.xlu1 %3029  ;;  %v3096_v42 = vsel %vm3063_vm5, %v2350_v33, %v2994_v17 }
 0x19c   : > { %v6151_v9 = vsel %vm563_vm1, %v3069_v28, %v3030_v46 }
 0x19d   : > { %4516 = vmatprep.mubr.msk.bf16.mxu0 %vm3169_vm6, %v6151_v9 }
 0x19e   : > { %4517 = vmatmul.mubr.msk.bf16.vlgmr.msra.gmra.mrb[4].mxu0 %vm3169_vm6, %v6157_v3  ;;  %v3044_v57 = vpop.permute.xlu0 %3043 }
 0x19f   : > { %v2984_v48 = vpop.permute.xlu1 %2983  ;;  %4549 = vmatpush3.bf16.msra.mxu0 %v6020_v41  ;;  %v6178_v41 = vsel %vm563_vm1, %v3078_v16, %v3036_v25  ;;  %v6214_v25 = vsel %vm563_vm1, %v3090_v40, %v3044_v57 }
 0x1a0   : > { %4650 = vmatprep.subr.msk.bf16.mxu0 %vm3202_vm4, %v4736_v2  ;;  %v3081_v8 = vsel %vm3063_vm5, %v2345_v47, %v2984_v48 }
 0x1a2   : > { %v2998_v15 = vpop.permute.xlu0 %2997 }
 0x1a3   : > { %v3034_v24 = vpop.permute.xlu1 %3033  ;;  %4551 = vmatpush3.bf16.msra.mxu0 %v3557_v20  ;;  %v2432_v20 = vsel %vm2431_vm10, %v5993_v6, 0  ;;  %v6530_v6 = vmul.bf16 %v6132_v56, %v5986_v34 }
 0x1a4   : > { %v6175_v44 = vsel %vm563_vm1, %v3075_v10, %v3034_v24  ;;  %v6529_v10 = vmul.bf16 %v6126_v26, %v5975_v35 }
 0x1a5   : > { %4520 = vmatprep.mubr.msk.bf16.mxu0 %vm3169_vm6, %v6175_v44 }
 0x1a6   : > { %4521 = vmatmul.mubr.msk.bf16.gmra.mrb[8].mxu0 %vm3169_vm6, %v6178_v41  ;;  %v3048_v50 = vpop.permute.xlu0 %3047 }
 0x1a7   : > { %v2988_v4 = vpop.permute.xlu1 %2987  ;;  %v3139_v28 = vsel %vm563_vm1, %v3096_v42, %v3048_v50 }
 0x1a8   : > { %v3087_v63 = vsel %vm3063_vm5, %v2347_v13, %v2988_v4 }
 0x1aa   : > { %v3002_v38 = vpop.permute.xlu0 %3001 }
 0x1ab   : > { %v3038_v45 = vpop.permute.xlu1 %3037  ;;  %v3108_v24 = vsel %vm3063_vm5, %v6529_v10, %v3002_v38 }
 0x1ac   : > { %v6193_v31 = vsel %vm563_vm1, %v3081_v8, %v3038_v45  ;;  %v6531_v45 = vmul.bf16 %v6138_v22, %v5989_v32 }
 0x1ad   : > { %4524 = vmatprep.mubr.msk.bf16.mxu0 %vm3169_vm6, %v6193_v31 }
 0x1ae   : > { %4525 = vmatmul.mubr.msk.bf16.gmra.mrb[12].mxu0 %vm3169_vm6, %v6196_v37 }
 0x1af   : > { %v2992_v53 = vpop.permute.xlu1 %2991 }
 0x1b0   : > { %v3093_v2 = vsel %vm3063_vm5, %v2349_v39, %v2992_v53  ;;  %v3102_v39 = vsel %vm3063_vm5, %v6527_v27, %v2998_v15 }
 0x1b3   : > { %v3042_v47 = vpop.permute.xlu1 %3041 }
 0x1b4   : > { %v6211_v54 = vsel %vm563_vm1, %v3087_v63, %v3042_v47 }
 0x1b5   : > { %4528 = vmatprep.mubr.msk.bf16.mxu0 %vm3169_vm6, %v6211_v54 }
 0x1b6   : > { %v1849_v7 = vpop.permute.xlu0 %1848  ;;  %4529 = vmatmul.mubr.msk.bf16.gmra.mrb[16].mxu0 %vm3169_vm6, %v6214_v25 }
 0x1b7   : > { %v1857_v1 = vrot.slane %v1849_v7, %v5255_v52  ;;  %v2996_v60 = vpop.permute.xlu1 %2995 }
 0x1b8   : > { %v3099_v58 = vsel %vm3063_vm5, %v2351_v12, %v2996_v60  ;;  %v6528_v12 = vmul.bf16 %v6120_v30, %v5971_v62 }
 0x1b9   : > { %v4192_v13 = vcombine.low %v1846_v14, %v1857_v1 }
 0x1ba   : > { %v3052_v61 = vpop.permute.xlu0 %3051 }
 0x1bb   : > { %v2340_v11 = vmul.bf16 %v4192_v13, %v1835_v19  ;;  %v3046_v29 = vpop.permute.xlu1 %3045  ;;  %v3143_v33 = vsel %vm563_vm1, %v3102_v39, %v3052_v61 }
 0x1bc   : > { %v3137_v49 = vsel %vm563_vm1, %v3093_v2, %v3046_v29 }
 0x1bd   : > { %4532 = vmatprep.mubr.msk.bf16.mxu0 %vm3169_vm6, %v3137_v49 }
 0x1be   : > { %4533 = vmatmul.mubr.msk.bf16.gmra.mrb[20].mxu0 %vm3169_vm6, %v3139_v28  ;;  %v3056_v46 = vpop.permute.xlu0 %3055 }
 0x1bf   : > { %v3000_v5 = vpop.permute.xlu1 %2999  ;;  %v3147_v4 = vsel %vm563_vm1, %v3108_v24, %v3056_v46 }
 0x1c0   : > { %v3105_v59 = vsel %vm3063_vm5, %v6528_v12, %v3000_v5 }
 0x1c3   : > { %v3050_v43 = vpop.permute.xlu1 %3049 }
 0x1c4   : > { %v3141_v51 = vsel %vm563_vm1, %v3099_v58, %v3050_v43  ;;  %v2820_v17 = vpop.permute.xlu0 %2819 }
 0x1c5   : > { %4536 = vmatprep.mubr.msk.bf16.mxu0 %vm3169_vm6, %v3141_v51  ;;  %v2828_v48 = vrot.slane %v2820_v17, %v5255_v52 }
 0x1c6   : > { %4537 = vmatmul.mubr.msk.bf16.gmra.mrb[24].mxu0 %vm3169_vm6, %v3143_v33 }
 0x1c8   : > { %v3058_v30 = vpop.permute.xlu0 %3057 }
 0x1cb   : > { %v2809_v21 = vpop.permute.xlu1 %2808 }
 0x1cc   : > { %v2817_v55 = vrot.slane %v2809_v21, %v5255_v52  ;;  %v2974_v53 = vpop.permute.xlu0 %2973 }
 0x1cd   : > { %v3066_v34 = vsel %vm3063_vm5, %v2340_v11, %v2974_v53 }
 0x1ce   : > { %v4227_v23 = vcombine.low %v2817_v55, %v2828_v48 }
 0x1cf   : > { %v3054_v57 = vpop.permute.xlu1 %3053 }
 0x1d0   : > { %v2954_v16 = vmul.bf16 %v4227_v23, %v2432_v20  ;;  %v3145_v15 = vsel %vm563_vm1, %v3105_v59, %v3054_v57 }
 0x1d1   : > { %4540 = vmatprep.mubr.msk.bf16.mxu0 %vm3169_vm6, %v3145_v15 }
 0x1d2   : > { %4541 = vmatmul.mubr.msk.bf16.gmra.mrb[28].mxu0 %vm3169_vm6, %v3147_v4  ;;  %3061 = vrot.lane.b32.xlu0 %v2954_v16, %s4772_s26 }
 0x1d3   : > { %v3004_v62 = vpop.permute.xlu1 %3003 }
 0x1d4   : > { %v3111_v35 = vsel %vm3063_vm5, %v6530_v6, %v3004_v62 }
 0x1d5   : > { %v3149_v26 = vsel %vm563_vm1, %v3111_v35, %v3058_v30 }
 0x1d6   : > { %4544 = vmatprep.mubr.msk.bf16.mxu0 %vm3169_vm6, %v3149_v26 }
 0x1d7   : > { %v3006_v8 = vpop.permute.xlu1 %3005 }
 0x1d8   : > { %v3114_v36 = vsel %vm3063_vm5, %v6531_v45, %v3006_v8 }
 0x1db   : > { %v3060_v50 = vpop.permute.xlu1 %3059 }
 0x1dc   : > { %v3151_v38 = vsel %vm563_vm1, %v3114_v36, %v3060_v50 }
 0x1dd   : > { %4545 = vmatmul.mubr.msk.bf16.gmra.mrb[32].mxu0 %vm3169_vm6, %v3151_v38 }
 0x1de   : > { %4552 = vmatprep.mubr.msk.bf16.mxu0 %vm3169_vm6, %v6157_v3 }
 0x1df   : > { %v3028_v56 = vpop.permute.xlu1 %3027 }
 0x1e0   : > { %v3119_v63 = vsel %vm563_vm1, %v3066_v34, %v3028_v56 }
 0x1e1   : > { %4480 = vmatprep.mubr.msk.bf16.mxu1 %vm3169_vm6, %v3119_v63 }
 0x1e2   : > { %4481 = vmatmul.mubr.msk.bf16.vlgmr.msra.gmra.mrb[36].mxu1 %vm3169_vm6, %v6151_v9 }
 0x1e3   : > { %4484 = vmatprep.mubr.msk.bf16.mxu1 %vm3169_vm6, %v6157_v3  ;;  %v2223_v32 = vpop.permute.xlu1 %2222  ;;  %v2212_v3 = vpop.permute.xlu0 %2211 }
 0x1e4   : > { %v2231_v22 = vrot.slane %v2223_v32, %v5255_v52  ;;  %v2220_v9 = vrot.slane %v2212_v3, %v5255_v52  ;;  %v6334_v52 = vld [vmem:[%s6456_s9] ss:$0 sm:$0xff] }
 0x1e5   : > { %4553 = vmatmul.mubr.msk.bf16.vlgmr.msra.gmra.mrb[4].mxu0 %vm3169_vm6, %v6175_v44 }
 0x1e6   : > { %4556 = vmatprep.mubr.msk.bf16.mxu0 %vm3169_vm6, %v6178_v41 }
 0x1ea   : > { %4485 = vmatmul.mubr.msk.bf16.gmra.mrb[40].mxu1 %vm3169_vm6, %v6175_v44  ;;  %v4209_v44 = vcombine.low %v2220_v9, %v2231_v22 }
 0x1eb   : > { %4488 = vmatprep.mubr.msk.bf16.mxu1 %vm3169_vm6, %v6178_v41 }
 0x1ec   : > { %v2357_v41 = vmul.bf16 %v4209_v44, %v6002_v0 }
 0x1ed   : > { %4557 = vmatmul.mubr.msk.bf16.gmra.mrb[8].mxu0 %vm3169_vm6, %v6193_v31 }
 0x1ee   : > { %4560 = vmatprep.mubr.msk.bf16.mxu0 %vm3169_vm6, %v6196_v37 }
 0x1f2   : > { %4489 = vmatmul.mubr.msk.bf16.gmra.mrb[44].mxu1 %vm3169_vm6, %v6193_v31  ;;  %v3008_v31 = vpop.permute.xlu1 %3007 }
 0x1f3   : > { %4492 = vmatprep.mubr.msk.bf16.mxu1 %vm3169_vm6, %v6196_v37  ;;  %v3117_v37 = vsel %vm3063_vm5, %v2357_v41, %v3008_v31 }
 0x1f5   : > { %4561 = vmatmul.mubr.msk.bf16.gmra.mrb[12].mxu0 %vm3169_vm6, %v6211_v54 }
 0x1f6   : > { %4564 = vmatprep.mubr.msk.bf16.mxu0 %vm3169_vm6, %v6214_v25 }
 0x1fa   : > { %4493 = vmatmul.mubr.msk.bf16.gmra.mrb[48].mxu1 %vm3169_vm6, %v6211_v54 }
 0x1fb   : > { %4496 = vmatprep.mubr.msk.bf16.mxu1 %vm3169_vm6, %v6214_v25 }
 0x1fd   : > { %4565 = vmatmul.mubr.msk.bf16.gmra.mrb[16].mxu0 %vm3169_vm6, %v3137_v49 }
 0x1fe   : > { %4568 = vmatprep.mubr.msk.bf16.mxu0 %vm3169_vm6, %v3139_v28 }
 0x202   : > { %4497 = vmatmul.mubr.msk.bf16.gmra.mrb[52].mxu1 %vm3169_vm6, %v3137_v49 }
 0x203   : > { %4500 = vmatprep.mubr.msk.bf16.mxu1 %vm3169_vm6, %v3139_v28 }
 0x205   : > { %4569 = vmatmul.mubr.msk.bf16.gmra.mrb[20].mxu0 %vm3169_vm6, %v3141_v51 }
 0x206   : > { %4572 = vmatprep.mubr.msk.bf16.mxu0 %vm3169_vm6, %v3143_v33 }
 0x20a   : > { %4501 = vmatmul.mubr.msk.bf16.gmra.mrb[56].mxu1 %vm3169_vm6, %v3141_v51 }
 0x20b   : > { %4504 = vmatprep.mubr.msk.bf16.mxu1 %vm3169_vm6, %v3143_v33 }
 0x20d   : > { %4573 = vmatmul.mubr.msk.bf16.gmra.mrb[24].mxu0 %vm3169_vm6, %v3145_v15 }
 0x20e   : > { %4576 = vmatprep.mubr.msk.bf16.mxu0 %vm3169_vm6, %v3147_v4 }
 0x212   : > { %4505 = vmatmul.mubr.msk.bf16.gmra.mrb[60].mxu1 %vm3169_vm6, %v3145_v15 }
 0x213   : > { %4508 = vmatprep.mubr.msk.bf16.mxu1 %vm3169_vm6, %v3147_v4 }
 0x215   : > { %4577 = vmatmul.mubr.msk.bf16.gmra.mrb[28].mxu0 %vm3169_vm6, %v3149_v26 }
 0x216   : > { %4580 = vmatprep.mubr.msk.bf16.mxu0 %vm3169_vm6, %v3151_v38 }
 0x21a   : > { %4509 = vmatmul.mubr.msk.bf16.gmra.mrb[64].mxu1 %vm3169_vm6, %v3149_v26 }
 0x244   : > { %v3062_v47 = vpop.permute.xlu0 %3061 }
 0x245   : > { %v3153_v40 = vsel %vm563_vm1, %v3117_v37, %v3062_v47 }
 0x246   : > { %4581 = vmatmul.mubr.msk.bf16.gmra.mrb[32].mxu0 %vm3169_vm6, %v3153_v40 }
 0x2b5   : > { %v4482_v54 = vpop.f32.mrb[36].mxu1 }
 0x2b6   : > { %v3240_v25 = vpop.f32.mrb[37].mxu1 }
 0x2b7   : > { %v4483_v7 = vpop.f32.mrb[38].mxu1 }
 0x2b8   : > { %v3243_v14 = vpop.f32.mrb[39].mxu1  ;;  %v4554_v1 = vpop.f32.mrb[4].mxu0 }
 0x2b9   : > { %v4584_v0 = vadd.f32 %v4554_v1, %v4482_v54  ;;  %v3593_v60 = vpop.f32.mrb[5].mxu0 }
 0x2ba   : > { %v4585_v13 = vadd.f32 %v3593_v60, %v3240_v25  ;;  %v4555_v18 = vpop.f32.mrb[6].mxu0 }
 0x2bb   : > { %v3761_v19 = vadd.f32 %v4584_v0, %v6334_v52  ;;  %v4586_v61 = vadd.f32 %v4555_v18, %v4483_v7  ;;  %v3596_v2 = vpop.f32.mrb[7].mxu0 }
 0x2bc   : > { %v3759_v11 = vadd.f32 %v4585_v13, %v6334_v52  ;;  %v4587_v29 = vadd.f32 %v3596_v2, %v3243_v14 }
 0x2bd   : > { %v3793_v42 = vmax.f32 %v3761_v19, 0.0  ;;  %v3762_v49 = vadd.f32 %v4586_v61, %v6334_v52  ;;  %v4486_v28 = vpop.f32.mrb[40].mxu1 }
 0x2be   : > { %v3791_v46 = vmax.f32 %v3759_v11, 0.0  ;;  %v3760_v5 = vadd.f32 %v4587_v29, %v6334_v52  ;;  %v3256_v58 = vpop.f32.mrb[41].mxu1 }
 0x2bf   : > { %v4324_v43 = vpack.c.bf16 %v3793_v42, %v3793_v42  ;;  %v3794_v27 = vmax.f32 %v3762_v49, 0.0  ;;  %v4487_v39 = vpop.f32.mrb[42].mxu1 }
 0x2c0   : > { %v4322_v51 = vpack.c.bf16 %v3791_v46, %v3791_v46  ;;  %v3792_v33 = vmax.f32 %v3760_v5, 0.0  ;;  %v3259_v17 = vpop.f32.mrb[43].mxu1  ;;  %v4558_v48 = vpop.f32.mrb[8].mxu0 }
 0x2c1   : > { %3954 = vst.msk [vmem:[%s6343_s13 + $0x8] sm:$0xf] %vm3951_vm11, %v4324_v43  ;;  %v4325_v21 = vpack.c.bf16 %v3794_v27, %v3794_v27  ;;  %v4588_v55 = vadd.f32 %v4558_v48, %v4486_v28  ;;  %v3609_v23 = vpop.f32.mrb[9].mxu0 }
 0x2c2   : > { %3952 = vst.msk [vmem:[%s6343_s13] sm:$0xf] %vm3951_vm11, %v4322_v51  ;;  %v4323_v12 = vpack.c.bf16 %v3792_v33, %v3792_v33  ;;  %v4589_v59 = vadd.f32 %v3609_v23, %v3256_v58  ;;  %v4559_v20 = vpop.f32.mrb[10].mxu0 }
 0x2c3   : > { %3955 = vst.msk [vmem:[%s6343_s13 + $0xc] sm:$0xf] %vm3951_vm11, %v4325_v21  ;;  %v3765_v57 = vadd.f32 %v4588_v55, %v6334_v52  ;;  %v4590_v10 = vadd.f32 %v4559_v20, %v4487_v39  ;;  %v3612_v24 = vpop.f32.mrb[11].mxu0 }
 0x2c4   : > { %3953 = vst.msk [vmem:[%s6343_s13 + $0x4] sm:$0xf] %vm3951_vm11, %v4323_v12  ;;  %v3763_v16 = vadd.f32 %v4589_v59, %v6334_v52  ;;  %v4591_v15 = vadd.f32 %v3612_v24, %v3259_v17 }
 0x2c5   : > { %v3797_v4 = vmax.f32 %v3765_v57, 0.0  ;;  %v3766_v62 = vadd.f32 %v4590_v10, %v6334_v52  ;;  %v4490_v30 = vpop.f32.mrb[44].mxu1 }
 0x2c6   : > { %v3795_v6 = vmax.f32 %v3763_v16, 0.0  ;;  %v3764_v35 = vadd.f32 %v4591_v15, %v6334_v52  ;;  %v3272_v26 = vpop.f32.mrb[45].mxu1 }
 0x2c7   : > { %v4328_v8 = vpack.c.bf16 %v3797_v4, %v3797_v4  ;;  %v3798_v45 = vmax.f32 %v3766_v62, 0.0  ;;  %v4491_v36 = vpop.f32.mrb[46].mxu1 }
 0x2c8   : > { %v4326_v50 = vpack.c.bf16 %v3795_v6, %v3795_v6  ;;  %v3796_v53 = vmax.f32 %v3764_v35, 0.0  ;;  %v3275_v38 = vpop.f32.mrb[47].mxu1  ;;  %v4562_v34 = vpop.f32.mrb[12].mxu0 }
 0x2c9   : > { %3958 = vst.msk [vmem:[%s6343_s13 + $0x18] sm:$0xf] %vm3951_vm11, %v4328_v8  ;;  %v4329_v56 = vpack.c.bf16 %v3798_v45, %v3798_v45  ;;  %v4592_v63 = vadd.f32 %v4562_v34, %v4490_v30  ;;  %v3625_v32 = vpop.f32.mrb[13].mxu0 }
 0x2ca   : > { %3956 = vst.msk [vmem:[%s6343_s13 + $0x10] sm:$0xf] %vm3951_vm11, %v4326_v50  ;;  %v4327_v3 = vpack.c.bf16 %v3796_v53, %v3796_v53  ;;  %v4593_v22 = vadd.f32 %v3625_v32, %v3272_v26  ;;  %v4563_v9 = vpop.f32.mrb[14].mxu0 }
 0x2cb   : > { %3959 = vst.msk [vmem:[%s6343_s13 + $0x1c] sm:$0xf] %vm3951_vm11, %v4329_v56  ;;  %v3769_v44 = vadd.f32 %v4592_v63, %v6334_v52  ;;  %v4594_v41 = vadd.f32 %v4563_v9, %v4491_v36  ;;  %v3628_v31 = vpop.f32.mrb[15].mxu0 }
 0x2cc   : > { %3957 = vst.msk [vmem:[%s6343_s13 + $0x14] sm:$0xf] %vm3951_vm11, %v4327_v3  ;;  %v3767_v37 = vadd.f32 %v4593_v22, %v6334_v52  ;;  %v4595_v47 = vadd.f32 %v3628_v31, %v3275_v38 }
 0x2cd   : > { %v3801_v40 = vmax.f32 %v3769_v44, 0.0  ;;  %v3770_v54 = vadd.f32 %v4594_v41, %v6334_v52  ;;  %v4494_v25 = vpop.f32.mrb[48].mxu1 }
 0x2ce   : > { %v3799_v7 = vmax.f32 %v3767_v37, 0.0  ;;  %v3768_v14 = vadd.f32 %v4595_v47, %v6334_v52  ;;  %v3288_v1 = vpop.f32.mrb[49].mxu1 }
 0x2cf   : > { %v4332_v0 = vpack.c.bf16 %v3801_v40, %v3801_v40  ;;  %v3802_v60 = vmax.f32 %v3770_v54, 0.0  ;;  %v4495_v13 = vpop.f32.mrb[50].mxu1 }
 0x2d0   : > { %v4330_v18 = vpack.c.bf16 %v3799_v7, %v3799_v7  ;;  %v3800_v19 = vmax.f32 %v3768_v14, 0.0  ;;  %v3291_v61 = vpop.f32.mrb[51].mxu1  ;;  %v4566_v2 = vpop.f32.mrb[16].mxu0 }
 0x2d1   : > { %3962 = vst.msk [vmem:[%s6343_s13 + $0x28] sm:$0xf] %vm3951_vm11, %v4332_v0  ;;  %v4333_v11 = vpack.c.bf16 %v3802_v60, %v3802_v60  ;;  %v4596_v29 = vadd.f32 %v4566_v2, %v4494_v25  ;;  %v3641_v42 = vpop.f32.mrb[17].mxu0 }
 0x2d2   : > { %3960 = vst.msk [vmem:[%s6343_s13 + $0x20] sm:$0xf] %vm3951_vm11, %v4330_v18  ;;  %v4331_v49 = vpack.c.bf16 %v3800_v19, %v3800_v19  ;;  %v4597_v28 = vadd.f32 %v3641_v42, %v3288_v1  ;;  %v4567_v46 = vpop.f32.mrb[18].mxu0 }
 0x2d3   : > { %3963 = vst.msk [vmem:[%s6343_s13 + $0x2c] sm:$0xf] %vm3951_vm11, %v4333_v11  ;;  %v3773_v5 = vadd.f32 %v4596_v29, %v6334_v52  ;;  %v4598_v58 = vadd.f32 %v4567_v46, %v4495_v13  ;;  %v3644_v43 = vpop.f32.mrb[19].mxu0 }
 0x2d4   : > { %3961 = vst.msk [vmem:[%s6343_s13 + $0x24] sm:$0xf] %vm3951_vm11, %v4331_v49  ;;  %v3771_v27 = vadd.f32 %v4597_v28, %v6334_v52  ;;  %v4599_v39 = vadd.f32 %v3644_v43, %v3291_v61 }
 0x2d5   : > { %v3805_v51 = vmax.f32 %v3773_v5, 0.0  ;;  %v3774_v33 = vadd.f32 %v4598_v58, %v6334_v52  ;;  %v4498_v17 = vpop.f32.mrb[52].mxu1 }
 0x2d6   : > { %v3803_v48 = vmax.f32 %v3771_v27, 0.0  ;;  %v3772_v21 = vadd.f32 %v4599_v39, %v6334_v52  ;;  %v3304_v55 = vpop.f32.mrb[53].mxu1 }
 0x2d7   : > { %v4336_v23 = vpack.c.bf16 %v3805_v51, %v3805_v51  ;;  %v3806_v12 = vmax.f32 %v3774_v33, 0.0  ;;  %v4499_v59 = vpop.f32.mrb[54].mxu1 }
 0x2d8   : > { %v4334_v20 = vpack.c.bf16 %v3803_v48, %v3803_v48  ;;  %v3804_v57 = vmax.f32 %v3772_v21, 0.0  ;;  %v3307_v10 = vpop.f32.mrb[55].mxu1  ;;  %v4570_v24 = vpop.f32.mrb[20].mxu0 }
 0x2d9   : > { %3966 = vst.msk [vmem:[%s6343_s13 + $0x38] sm:$0xf] %vm3951_vm11, %v4336_v23  ;;  %v4337_v16 = vpack.c.bf16 %v3806_v12, %v3806_v12  ;;  %v4600_v15 = vadd.f32 %v4570_v24, %v4498_v17  ;;  %v3657_v4 = vpop.f32.mrb[21].mxu0 }
 0x2da   : > { %3964 = vst.msk [vmem:[%s6343_s13 + $0x30] sm:$0xf] %vm3951_vm11, %v4334_v20  ;;  %v4335_v62 = vpack.c.bf16 %v3804_v57, %v3804_v57  ;;  %v4601_v30 = vadd.f32 %v3657_v4, %v3304_v55  ;;  %v4571_v6 = vpop.f32.mrb[22].mxu0 }
 0x2db   : > { %3967 = vst.msk [vmem:[%s6343_s13 + $0x3c] sm:$0xf] %vm3951_vm11, %v4337_v16  ;;  %v3777_v35 = vadd.f32 %v4600_v15, %v6334_v52  ;;  %v4602_v26 = vadd.f32 %v4571_v6, %v4499_v59  ;;  %v3660_v8 = vpop.f32.mrb[23].mxu0 }
 0x2dc   : > { %3965 = vst.msk [vmem:[%s6343_s13 + $0x34] sm:$0xf] %vm3951_vm11, %v4335_v62  ;;  %v3775_v45 = vadd.f32 %v4601_v30, %v6334_v52  ;;  %v4603_v36 = vadd.f32 %v3660_v8, %v3307_v10 }
 0x2dd   : > { %v3809_v50 = vmax.f32 %v3777_v35, 0.0  ;;  %v3778_v53 = vadd.f32 %v4602_v26, %v6334_v52  ;;  %v4502_v38 = vpop.f32.mrb[56].mxu1 }
 0x2de   : > { %v3807_v34 = vmax.f32 %v3775_v45, 0.0  ;;  %v3776_v56 = vadd.f32 %v4603_v36, %v6334_v52  ;;  %v3320_v63 = vpop.f32.mrb[57].mxu1 }
 0x2df   : > { %v4340_v32 = vpack.c.bf16 %v3809_v50, %v3809_v50  ;;  %v3810_v3 = vmax.f32 %v3778_v53, 0.0  ;;  %v4503_v22 = vpop.f32.mrb[58].mxu1 }
 0x2e0   : > { %v4338_v9 = vpack.c.bf16 %v3807_v34, %v3807_v34  ;;  %v3808_v44 = vmax.f32 %v3776_v56, 0.0  ;;  %v3323_v41 = vpop.f32.mrb[59].mxu1  ;;  %v4574_v31 = vpop.f32.mrb[24].mxu0 }
 0x2e1   : > { %3970 = vst.msk [vmem:[%s6343_s13 + $0x48] sm:$0xf] %vm3951_vm11, %v4340_v32  ;;  %v4341_v37 = vpack.c.bf16 %v3810_v3, %v3810_v3  ;;  %v4604_v47 = vadd.f32 %v4574_v31, %v4502_v38  ;;  %v3673_v40 = vpop.f32.mrb[25].mxu0 }
 0x2e2   : > { %3968 = vst.msk [vmem:[%s6343_s13 + $0x40] sm:$0xf] %vm3951_vm11, %v4338_v9  ;;  %v4339_v54 = vpack.c.bf16 %v3808_v44, %v3808_v44  ;;  %v4605_v25 = vadd.f32 %v3673_v40, %v3320_v63  ;;  %v4575_v7 = vpop.f32.mrb[26].mxu0 }
 0x2e3   : > { %3971 = vst.msk [vmem:[%s6343_s13 + $0x4c] sm:$0xf] %vm3951_vm11, %v4341_v37  ;;  %v3781_v14 = vadd.f32 %v4604_v47, %v6334_v52  ;;  %v4606_v1 = vadd.f32 %v4575_v7, %v4503_v22  ;;  %v3676_v0 = vpop.f32.mrb[27].mxu0 }
 0x2e4   : > { %3969 = vst.msk [vmem:[%s6343_s13 + $0x44] sm:$0xf] %vm3951_vm11, %v4339_v54  ;;  %v3779_v60 = vadd.f32 %v4605_v25, %v6334_v52  ;;  %v4607_v13 = vadd.f32 %v3676_v0, %v3323_v41 }
 0x2e5   : > { %v3813_v18 = vmax.f32 %v3781_v14, 0.0  ;;  %v3782_v19 = vadd.f32 %v4606_v1, %v6334_v52  ;;  %v4506_v61 = vpop.f32.mrb[60].mxu1 }
 0x2e6   : > { %v3811_v2 = vmax.f32 %v3779_v60, 0.0  ;;  %v3780_v11 = vadd.f32 %v4607_v13, %v6334_v52  ;;  %v3336_v29 = vpop.f32.mrb[61].mxu1 }
 0x2e7   : > { %v4344_v42 = vpack.c.bf16 %v3813_v18, %v3813_v18  ;;  %v3814_v49 = vmax.f32 %v3782_v19, 0.0  ;;  %v4507_v28 = vpop.f32.mrb[62].mxu1 }
 0x2e8   : > { %v4342_v46 = vpack.c.bf16 %v3811_v2, %v3811_v2  ;;  %v3812_v5 = vmax.f32 %v3780_v11, 0.0  ;;  %v3339_v58 = vpop.f32.mrb[63].mxu1  ;;  %v4578_v43 = vpop.f32.mrb[28].mxu0 }
 0x2e9   : > { %3974 = vst.msk [vmem:[%s6343_s13 + $0x58] sm:$0xf] %vm3951_vm11, %v4344_v42  ;;  %v4345_v27 = vpack.c.bf16 %v3814_v49, %v3814_v49  ;;  %v4608_v39 = vadd.f32 %v4578_v43, %v4506_v61  ;;  %v3689_v51 = vpop.f32.mrb[29].mxu0 }
 0x2ea   : > { %3972 = vst.msk [vmem:[%s6343_s13 + $0x50] sm:$0xf] %vm3951_vm11, %v4342_v46  ;;  %v4343_v33 = vpack.c.bf16 %v3812_v5, %v3812_v5  ;;  %v4609_v17 = vadd.f32 %v3689_v51, %v3336_v29  ;;  %v4579_v48 = vpop.f32.mrb[30].mxu0 }
 0x2eb   : > { %3975 = vst.msk [vmem:[%s6343_s13 + $0x5c] sm:$0xf] %vm3951_vm11, %v4345_v27  ;;  %v3785_v21 = vadd.f32 %v4608_v39, %v6334_v52  ;;  %v4610_v55 = vadd.f32 %v4579_v48, %v4507_v28  ;;  %v3692_v23 = vpop.f32.mrb[31].mxu0 }
 0x2ec   : > { %3973 = vst.msk [vmem:[%s6343_s13 + $0x54] sm:$0xf] %vm3951_vm11, %v4343_v33  ;;  %v3783_v12 = vadd.f32 %v4609_v17, %v6334_v52  ;;  %v4611_v59 = vadd.f32 %v3692_v23, %v3339_v58 }
 0x2ed   : > { %v3817_v20 = vmax.f32 %v3785_v21, 0.0  ;;  %v3786_v57 = vadd.f32 %v4610_v55, %v6334_v52  ;;  %v4510_v10 = vpop.f32.mrb[64].mxu1 }
 0x2ee   : > { %v3815_v24 = vmax.f32 %v3783_v12, 0.0  ;;  %v3784_v16 = vadd.f32 %v4611_v59, %v6334_v52  ;;  %v3352_v15 = vpop.f32.mrb[65].mxu1 }
 0x2ef   : > { %v4348_v4 = vpack.c.bf16 %v3817_v20, %v3817_v20  ;;  %v3818_v62 = vmax.f32 %v3786_v57, 0.0  ;;  %v4511_v30 = vpop.f32.mrb[66].mxu1 }
 0x2f0   : > { %v4346_v6 = vpack.c.bf16 %v3815_v24, %v3815_v24  ;;  %v3816_v35 = vmax.f32 %v3784_v16, 0.0  ;;  %v3355_v26 = vpop.f32.mrb[67].mxu1 }
 0x2f1   : > { %3978 = vst.msk [vmem:[%s6343_s13 + $0x68] sm:$0xf] %vm3951_vm11, %v4348_v4  ;;  %v4349_v8 = vpack.c.bf16 %v3818_v62, %v3818_v62 }
 0x2f2   : > { %3976 = vst.msk [vmem:[%s6343_s13 + $0x60] sm:$0xf] %vm3951_vm11, %v4346_v6  ;;  %v4347_v45 = vpack.c.bf16 %v3816_v35, %v3816_v35 }
 0x2f3   : > { %3979 = vst.msk [vmem:[%s6343_s13 + $0x6c] sm:$0xf] %vm3951_vm11, %v4349_v8 }
 0x2f4   : > { %3977 = vst.msk [vmem:[%s6343_s13 + $0x64] sm:$0xf] %vm3951_vm11, %v4347_v45 }
 0x319   : > { %v4582_v36 = vpop.f32.mrb[32].mxu0 }
 0x31a   : > { %v4612_v50 = vadd.f32 %v4582_v36, %v4510_v10  ;;  %v3705_v53 = vpop.f32.mrb[33].mxu0 }
 0x31b   : > { %v4613_v38 = vadd.f32 %v3705_v53, %v3352_v15  ;;  %v4583_v34 = vpop.f32.mrb[34].mxu0 }
 0x31c   : > { %v3789_v56 = vadd.f32 %v4612_v50, %v6334_v52  ;;  %v4614_v63 = vadd.f32 %v4583_v34, %v4511_v30  ;;  %v3708_v32 = vpop.f32.mrb[35].mxu0 }
 0x31d   : > { %v3787_v3 = vadd.f32 %v4613_v38, %v6334_v52  ;;  %v4615_v22 = vadd.f32 %v3708_v32, %v3355_v26 }
 0x31e   : > { %v3821_v9 = vmax.f32 %v3789_v56, 0.0  ;;  %v3790_v44 = vadd.f32 %v4614_v63, %v6334_v52 }
 0x31f   : > { %v3819_v41 = vmax.f32 %v3787_v3, 0.0  ;;  %v3788_v31 = vadd.f32 %v4615_v22, %v6334_v52 }
 0x320   : > { %v4352_v37 = vpack.c.bf16 %v3821_v9, %v3821_v9  ;;  %v3822_v47 = vmax.f32 %v3790_v44, 0.0 }
 0x321   : > { %v4350_v40 = vpack.c.bf16 %v3819_v41, %v3819_v41  ;;  %v3820_v54 = vmax.f32 %v3788_v31, 0.0 }
 0x322   : > { %3982 = vst.msk [vmem:[%s6343_s13 + $0x78] sm:$0xf] %vm3951_vm11, %v4352_v37  ;;  %v4353_v25 = vpack.c.bf16 %v3822_v47, %v3822_v47 }
 0x323   : > { %3980 = vst.msk [vmem:[%s6343_s13 + $0x70] sm:$0xf] %vm3951_vm11, %v4350_v40  ;;  %v4351_v7 = vpack.c.bf16 %v3820_v54, %v3820_v54 }
 0x324   : > { %3983 = vst.msk [vmem:[%s6343_s13 + $0x7c] sm:$0xf] %vm3951_vm11, %v4353_v25 }
 0x325   : > { %3981 = vst.msk [vmem:[%s6343_s13 + $0x74] sm:$0xf] %vm3951_vm11, %v4351_v7 }
 0x326 PF: > { %s20_s15 = sadd.s32 1, %s4763_s15   ;;  %s6532_s13 = smov %s4759_s14 }
 0x327   : > { %p17_p5 = scmp.ge.s32.totalorder %s20_s15, 4   ;;  %s6533_s14 = smov %s6535_s16 }
 0x329   :  { %19 = sbr.rel (!%p17_p5) target bundleno = 2 (0x2), region = 99 }

</bundles_post_ra>
